<compile_context>
chip_gen: v7x
topology: tpu7x:2x2x1
jax: 0.10.0
libtpu: 0.0.40
codegen_flags: <defaults>
</compile_context>

<pallas_src>
import functools
import math

import jax
import jax.numpy as jnp
from jax.experimental import pallas as pl
from jax.experimental.pallas import tpu as pltpu


# Explicit scoped-VMEM budget: above v5e's 16 MiB default, below v7x's 64 MiB
# physical VMEM (v5e/v6e have 128 MiB physical).
_VMEM_LIMIT_BYTES = 48 * 1024 * 1024


# ----------------------------------------------------------------------------
# In-kernel helpers (pure jnp on VMEM-resident values)
# ----------------------------------------------------------------------------

def _layernorm(y, g, b, eps):
    mean = jnp.mean(y, axis=-1, keepdims=True)
    var = jnp.mean(jnp.square(y - mean), axis=-1, keepdims=True)
    return (y - mean) * jax.lax.rsqrt(var + eps) * g + b


def _mha(q, k, v, wo, bo, num_heads, scale):
    """q: (Sq, D) f32, k/v: (Sk, D) f32, wo: (D, D) bf16, bo: (1, D) f32.

    Returns (Sq, D) f32 = softmax(q k^T / sqrt(Dh)) v, out-projected (+ bo).
    Heads live on a leading batch axis: one batched QK^T, one softmax over
    (H, Sq, Sk), one batched PV, then a single full-K output projection.
    """
    f32, bf16 = jnp.float32, jnp.bfloat16
    D = q.shape[-1]
    Dh = D // num_heads

    q = q * scale  # fold 1/sqrt(Dh) into q: Sq*D mults instead of H*Sq*Sk

    def split_heads(t):
        return jnp.stack(
            [t[:, h * Dh:(h + 1) * Dh] for h in range(num_heads)], axis=0
        ).astype(bf16)                                            # (H, S, Dh)

    qh, kh, vh = split_heads(q), split_heads(k), split_heads(v)

    s = jnp.einsum('hqd,hkd->hqk', qh, kh,
                   preferred_element_type=f32)                    # (H, Sq, Sk)
    m = jnp.max(s, axis=-1, keepdims=True)
    e = jnp.exp(s - m)
    p = e * pl.reciprocal(jnp.sum(e, axis=-1, keepdims=True), approx=True)
    o = jnp.einsum('hqk,hkd->hqd', p.astype(bf16), vh,
                   preferred_element_type=f32)                    # (H, Sq, Dh)
    o = jnp.concatenate([o[h] for h in range(num_heads)], axis=-1)  # (Sq, D)

    # Single full-contraction output projection.
    return jnp.dot(o.astype(bf16), wo, preferred_element_type=f32) + bo


# ----------------------------------------------------------------------------
# Fused decoder-layer kernel (self-attn + LN1 + cross-attn + LN2 + FFN + LN3)
# grid=(B,) "parallel" — one batch element per grid step, everything in VMEM.
# ----------------------------------------------------------------------------

def _decoder_layer_kernel(tgt_ref, mem_ref,
                          sa_wqkv_ref, sa_bqkv_ref, sa_wo_ref, sa_bo_ref,
                          ln1_g_ref, ln1_b_ref,
                          ca_wqkv_ref, ca_bqkv_ref, ca_wo_ref, ca_bo_ref,
                          ln2_g_ref, ln2_b_ref,
                          w1_ref, b1_ref, w2_ref, b2_ref,
                          ln3_g_ref, ln3_b_ref,
                          o_ref, *, num_heads, scale, eps):
    f32, bf16 = jnp.float32, jnp.bfloat16
    x = tgt_ref[0]                              # (S, D) f32
    mem = mem_ref[0]                            # (Sk, D) f32
    D = x.shape[-1]

    # ---- self-attention: one fused (S, D) @ (D, 3D) QKV matmul ----
    qkv = jnp.dot(x.astype(bf16), sa_wqkv_ref[...],
                  preferred_element_type=f32) + sa_bqkv_ref[...]
    a = _mha(qkv[:, :D], qkv[:, D:2 * D], qkv[:, 2 * D:],
             sa_wo_ref[...], sa_bo_ref[...], num_heads, scale)
    x = _layernorm(x + a, ln1_g_ref[...], ln1_b_ref[...], eps)

    # ---- cross-attention: Q from tgt, fused KV from memory ----
    ca_wqkv = ca_wqkv_ref[...]
    ca_bqkv = ca_bqkv_ref[...]
    q = jnp.dot(x.astype(bf16), ca_wqkv[:, :D],
                preferred_element_type=f32) + ca_bqkv[:, :D]
    kv = jnp.dot(mem.astype(bf16), ca_wqkv[:, D:],
                 preferred_element_type=f32) + ca_bqkv[:, D:]
    a = _mha(q, kv[:, :D], kv[:, D:],
             ca_wo_ref[...], ca_bo_ref[...], num_heads, scale)
    x = _layernorm(x + a, ln2_g_ref[...], ln2_b_ref[...], eps)

    # ---- FFN (ReLU); the (S, F) intermediate never leaves VMEM ----
    h = jnp.dot(x.astype(bf16), w1_ref[...],
                preferred_element_type=f32) + b1_ref[...]
    h = jnp.maximum(h, 0.0)
    y = jnp.dot(h.astype(bf16), w2_ref[...],
                preferred_element_type=f32) + b2_ref[...]
    x = _layernorm(x + y, ln3_g_ref[...], ln3_b_ref[...], eps)

    o_ref[0] = x.astype(o_ref.dtype)


def decoder_layer(tgt, memory, lp, num_heads, eps=1e-5):
    """tgt, memory: (B, S, D) f32 -> (B, S, D) f32 (one full decoder layer)."""
    B, S, D = tgt.shape
    Sk = memory.shape[1]
    F = lp["w1"].shape[1]
    scale = 1.0 / math.sqrt(D // num_heads)
    sa, ca = lp["self_attn"], lp["cross_attn"]

    def const(shape):
        return pl.BlockSpec(shape, lambda b: (0, 0))

    kernel = functools.partial(_decoder_layer_kernel, num_heads=num_heads,
                               scale=scale, eps=eps)
    return pl.pallas_call(
        kernel,
        out_shape=jax.ShapeDtypeStruct((B, S, D), jnp.float32),
        grid=(B,),
        in_specs=[
            pl.BlockSpec((1, S, D), lambda b: (b, 0, 0)),     # tgt
            pl.BlockSpec((1, Sk, D), lambda b: (b, 0, 0)),    # memory
            const((D, 3 * D)), const((1, 3 * D)),             # self-attn QKV
            const((D, D)), const((1, D)),                     # self-attn out-proj
            const((1, D)), const((1, D)),                     # LN1
            const((D, 3 * D)), const((1, 3 * D)),             # cross-attn QKV
            const((D, D)), const((1, D)),                     # cross-attn out-proj
            const((1, D)), const((1, D)),                     # LN2
            const((D, F)), const((1, F)),                     # FFN w1/b1
            const((F, D)), const((1, D)),                     # FFN w2/b2
            const((1, D)), const((1, D)),                     # LN3
        ],
        out_specs=pl.BlockSpec((1, S, D), lambda b: (b, 0, 0)),
        compiler_params=pltpu.CompilerParams(
            dimension_semantics=("parallel",),
            vmem_limit_bytes=_VMEM_LIMIT_BYTES),
    )(tgt, memory,
      sa["wqkv"], sa["bqkv"].reshape(1, 3 * D), sa["wo"], sa["bo"].reshape(1, D),
      lp["ln1_g"].reshape(1, D), lp["ln1_b"].reshape(1, D),
      ca["wqkv"], ca["bqkv"].reshape(1, 3 * D), ca["wo"], ca["bo"].reshape(1, D),
      lp["ln2_g"].reshape(1, D), lp["ln2_b"].reshape(1, D),
      lp["w1"], lp["b1"].reshape(1, F), lp["w2"], lp["b2"].reshape(1, D),
      lp["ln3_g"].reshape(1, D), lp["ln3_b"].reshape(1, D))


# ----------------------------------------------------------------------------
# Fused ctc_linear + LogSoftmax kernel (vocab padded to a multiple of 128)
# ----------------------------------------------------------------------------

def _linear_logsoftmax_kernel(x_ref, w_ref, b_ref, o_ref):
    logits = jnp.dot(x_ref[...].astype(jnp.bfloat16), w_ref[...],
                     preferred_element_type=jnp.float32) + b_ref[...]
    m = jnp.max(logits, axis=-1, keepdims=True)
    lse = jnp.log(jnp.sum(jnp.exp(logits - m), axis=-1, keepdims=True)) + m
    o_ref[...] = (logits - lse).astype(o_ref.dtype)


def _row_tile(m, cap=512):
    """Largest multiple of 8 that divides m, up to cap (else the full m)."""
    if m % 8 != 0:
        return m
    tm = min(m, cap)
    tm -= tm % 8
    while m % tm != 0:
        tm -= 8
    return tm


def linear_logsoftmax(x, w_pad, b_pad, v_real):
    """x: (M, D), w_pad: (D, Vp) bf16, b_pad: (Vp,) f32 (padded cols get -1e30).

    Returns log-probs (M, v_real). Vp is a multiple of 128, so stores and the
    whole logits/max/exp/sum path are lane-dense; the padded columns contribute
    exp(-1e30)=0 to the normalizer and are sliced off here.
    """
    M, D = x.shape
    Vp = w_pad.shape[1]
    tm = _row_tile(M)
    out = pl.pallas_call(
        _linear_logsoftmax_kernel,
        out_shape=jax.ShapeDtypeStruct((M, Vp), jnp.float32),
        grid=(M // tm,),
        in_specs=[
            pl.BlockSpec((tm, D), lambda i: (i, 0)),
            pl.BlockSpec((D, Vp), lambda i: (0, 0)),
            pl.BlockSpec((1, Vp), lambda i: (0, 0)),
        ],
        out_specs=pl.BlockSpec((tm, Vp), lambda i: (i, 0)),
        compiler_params=pltpu.CompilerParams(
            dimension_semantics=("parallel",),
            vmem_limit_bytes=_VMEM_LIMIT_BYTES),
    )(x, w_pad, b_pad.reshape(1, Vp))
    return out[:, :v_real]


# ----------------------------------------------------------------------------
# Model glue (plain JAX: layout transposes, positional encoding)
# ----------------------------------------------------------------------------

def positional_encoding_table(max_len, d_model):
    pos = jnp.arange(max_len, dtype=jnp.float32)[:, None]
    div = jnp.exp(jnp.arange(0, d_model, 2, dtype=jnp.float32)
                  * (-math.log(10000.0) / d_model))
    pe = jnp.zeros((max_len, d_model), dtype=jnp.float32)
    pe = pe.at[:, 0::2].set(jnp.sin(pos * div))
    pe = pe.at[:, 1::2].set(jnp.cos(pos * div))
    return pe                                               # (max_len, D)


def ctc_transformer_decoder_forward(x, params, *, num_heads, index_dim):
    """x: (S, B, D) float32 -> log-probs (S, B, index_dim)."""
    S, B, D = x.shape
    xb = jnp.transpose(x, (1, 0, 2))                        # (B, S, D), lane-dense D
    memory = xb                                             # detach is a no-op for fwd
    tgt = xb + params["pe"][None, :S, :]                    # PositionalEncoding (dropout=id)

    for lp in params["layers"]:
        tgt = decoder_layer(tgt, memory, lp, num_heads)     # one fused kernel / layer

    # TransformerDecoder default norm=None -> no final LayerNorm.
    out = linear_logsoftmax(tgt.reshape(B * S, D),
                            params["ctc_w"], params["ctc_b"], index_dim)
    return jnp.transpose(out.reshape(B, S, -1), (1, 0, 2))  # back to (S, B, V)


# ----------------------------------------------------------------------------
# Deterministic parameter initialization (matmul weights stored in bf16,
# CTC head padded to a lane-dense vocab width)
# ----------------------------------------------------------------------------

def init_params(key, index_dim, hidden_dim, heads, dim_feedforward, layers,
                max_len=512):
    bf16 = jnp.bfloat16

    def dense(k, fan_in, fan_out):
        kw, kb = jax.random.split(k)
        lim = 1.0 / math.sqrt(fan_in)
        w = jax.random.uniform(kw, (fan_in, fan_out), jnp.float32, -lim, lim)
        b = jax.random.uniform(kb, (fan_out,), jnp.float32, -lim, lim)
        return w, b

    def mha_params(k):
        ks = jax.random.split(k, 4)
        wq, bq = dense(ks[0], hidden_dim, hidden_dim)
        wk, bk = dense(ks[1], hidden_dim, hidden_dim)
        wv, bv = dense(ks[2], hidden_dim, hidden_dim)
        wo, bo = dense(ks[3], hidden_dim, hidden_dim)
        return dict(
            wqkv=jnp.concatenate([wq, wk, wv], axis=1).astype(bf16),  # (D, 3D)
            bqkv=jnp.concatenate([bq, bk, bv], axis=0),               # (3D,) f32
            wo=wo.astype(bf16), bo=bo)

    keys = jax.random.split(key, layers + 2)
    layer_params = []
    for li in range(layers):
        ks = jax.random.split(keys[li], 4)
        w1, b1 = dense(ks[2], hidden_dim, dim_feedforward)
        w2, b2 = dense(ks[3], dim_feedforward, hidden_dim)
        layer_params.append(dict(
            self_attn=mha_params(ks[0]),
            cross_attn=mha_params(ks[1]),
            w1=w1.astype(bf16), b1=b1, w2=w2.astype(bf16), b2=b2,
            ln1_g=jnp.ones((hidden_dim,), jnp.float32), ln1_b=jnp.zeros((hidden_dim,), jnp.float32),
            ln2_g=jnp.ones((hidden_dim,), jnp.float32), ln2_b=jnp.zeros((hidden_dim,), jnp.float32),
            ln3_g=jnp.ones((hidden_dim,), jnp.float32), ln3_b=jnp.zeros((hidden_dim,), jnp.float32),
        ))

    # CTC head: pad vocab to a multiple of 128 lanes. Zero weight columns +
    # -1e30 bias keep the log-softmax normalizer exact; wrapper slices back.
    ctc_w, ctc_b = dense(keys[layers], hidden_dim, index_dim)
    v_pad = ((index_dim + 127) // 128) * 128
    ctc_w_p = jnp.zeros((hidden_dim, v_pad), jnp.float32).at[:, :index_dim].set(ctc_w)
    ctc_b_p = jnp.full((v_pad,), -1e30, jnp.float32).at[:index_dim].set(ctc_b)

    return dict(
        layers=layer_params,
        ctc_w=ctc_w_p.astype(bf16), ctc_b=ctc_b_p,
        pe=positional_encoding_table(max_len, hidden_dim),
    )


# ----------------------------------------------------------------------------
# Main
# ----------------------------------------------------------------------------

if __name__ == "__main__":
    # Small shapes consistent with the module (scaled-down hyperparameters).
    S, B = 8, 2                 # sequence length, batch
    hidden_dim = 32             # d_model
    heads = 4
    dim_feedforward = 64
    layers = 2
    index_dim = 12              # CTC vocabulary size

    key = jax.random.PRNGKey(0)
    kx, kp = jax.random.split(key)
    x = jax.random.normal(kx, (S, B, hidden_dim), dtype=jnp.float32)
    params = init_params(kp, index_dim, hidden_dim, heads, dim_feedforward, layers)

    fwd = jax.jit(functools.partial(ctc_transformer_decoder_forward,
                                    num_heads=heads, index_dim=index_dim))
    out = fwd(x, params)
    out = jax.block_until_ready(out)

    assert out.shape == (S, B, index_dim), out.shape
    # Sanity: rows of log-softmax should (log-)sum to ~0.
    row_sums = jnp.exp(out).sum(-1)
    assert bool(jnp.all(jnp.abs(row_sums - 1.0) < 1e-4))
    assert bool(jnp.all(jnp.isfinite(out)))
    print("KERNEL_OK")
</pallas_src>

<mosaic_0001>
module attributes {stable_mosaic.version = 11 : i64} {
  func.func @_linear_logsoftmax_kernel(%arg0: i32, %arg1: memref<16x32xf32, #tpu.memory_space<vmem>>, %arg2: memref<32x128xbf16, #tpu.memory_space<vmem>>, %arg3: memref<1x128xf32, #tpu.memory_space<vmem>>, %arg4: memref<16x128xf32, #tpu.memory_space<vmem>>) attributes {dimension_semantics = [#tpu.dimension_semantics<parallel>], iteration_bounds = array<i64: 1>, scalar_prefetch = 0 : i64, scratch_operands = 0 : i64, tpu.core_type = #tpu.core_type<tc>, window_params = [{transform_indices = @transform_0, window_bounds = array<i64: 16, 32>}, {pipeline_mode = #tpu.pipeline_mode<synchronous>, transform_indices = @transform_1, window_bounds = array<i64: 32, 128>}, {pipeline_mode = #tpu.pipeline_mode<synchronous>, transform_indices = @transform_2, window_bounds = array<i64: 1, 128>}, {transform_indices = @transform_3, window_bounds = array<i64: 16, 128>}]} {
    %c0 = arith.constant 0 : index
    %c0_0 = arith.constant 0 : index
    %0 = vector.load %arg1[%c0, %c0_0] : memref<16x32xf32, #tpu.memory_space<vmem>>, vector<16x32xf32>
    %1 = arith.truncf %0 : vector<16x32xf32> to vector<16x32xbf16>
    %c0_1 = arith.constant 0 : index
    %c0_2 = arith.constant 0 : index
    %2 = vector.load %arg2[%c0_1, %c0_2] : memref<32x128xbf16, #tpu.memory_space<vmem>>, vector<32x128xbf16>
    %cst = arith.constant dense<0.000000e+00> : vector<16x128xf32>
    %3 = tpu.matmul %1, %2, %cst {dimension_numbers = #tpu.dot_dimension_numbers<[1], [0], [0], [1], [0, 0, 1, 1], [], []>} : vector<16x32xbf16>, vector<32x128xbf16>, vector<16x128xf32> -> vector<16x128xf32>
    %c0_3 = arith.constant 0 : index
    %c0_4 = arith.constant 0 : index
    %4 = vector.load %arg3[%c0_3, %c0_4] : memref<1x128xf32, #tpu.memory_space<vmem>>, vector<1x128xf32>
    %5 = vector.broadcast %4 : vector<1x128xf32> to vector<16x128xf32>
    %6 = arith.addf %3, %5 : vector<16x128xf32>
    %cst_5 = arith.constant dense<0xFF800000> : vector<16xf32>
    %7 = vector.multi_reduction <maximumf>, %6, %cst_5 [1] : vector<16x128xf32> to vector<16xf32>
    %8 = vector.shape_cast %7 : vector<16xf32> to vector<16x1xf32>
    %9 = vector.broadcast %8 : vector<16x1xf32> to vector<16x128xf32>
    %10 = arith.subf %6, %9 : vector<16x128xf32>
    %11 = math.exp %10 : vector<16x128xf32>
    %cst_6 = arith.constant dense<0.000000e+00> : vector<16xf32>
    %12 = vector.multi_reduction <add>, %11, %cst_6 [1] : vector<16x128xf32> to vector<16xf32>
    %13 = vector.shape_cast %12 : vector<16xf32> to vector<16x1xf32>
    %14 = math.log %13 : vector<16x1xf32>
    %15 = arith.addf %14, %8 : vector<16x1xf32>
    %16 = vector.broadcast %15 : vector<16x1xf32> to vector<16x128xf32>
    %17 = arith.subf %6, %16 : vector<16x128xf32>
    %c0_7 = arith.constant 0 : index
    %c0_8 = arith.constant 0 : index
    %18 = vector.load %arg4[%c0_7, %c0_8] : memref<16x128xf32, #tpu.memory_space<vmem>>, vector<16x128xf32>
    tpu.vector_store %arg4[%c0_7, %c0_8], %17 {strides = array<i32>} : memref<16x128xf32, #tpu.memory_space<vmem>>, vector<16x128xf32>,
    return
  }
  func.func @transform_0(%arg0: i32) -> (i32, i32) {
    %c0_i32 = arith.constant 0 : i32
    %c0_i32_0 = arith.constant 0 : i32
    return %arg0, %c0_i32 : i32, i32
  }
  func.func @transform_1(%arg0: i32) -> (i32, i32) {
    %c0_i32 = arith.constant 0 : i32
    %c0_i32_0 = arith.constant 0 : i32
    %c0_i32_1 = arith.constant 0 : i32
    return %c0_i32, %c0_i32_0 : i32, i32
  }
  func.func @transform_2(%arg0: i32) -> (i32, i32) {
    %c0_i32 = arith.constant 0 : i32
    %c0_i32_0 = arith.constant 0 : i32
    %c0_i32_1 = arith.constant 0 : i32
    return %c0_i32, %c0_i32_0 : i32, i32
  }
  func.func @transform_3(%arg0: i32) -> (i32, i32) {
    %c0_i32 = arith.constant 0 : i32
    %c0_i32_0 = arith.constant 0 : i32
    return %arg0, %c0_i32 : i32, i32
  }
}

module attributes {stable_mosaic.version = 11 : i64} {
  func.func @_decoder_layer_kernel(%arg0: i32, %arg1: memref<1x8x32xf32, #tpu.memory_space<vmem>>, %arg2: memref<1x8x32xf32, #tpu.memory_space<vmem>>, %arg3: memref<32x96xbf16, #tpu.memory_space<vmem>>, %arg4: memref<1x96xf32, #tpu.memory_space<vmem>>, %arg5: memref<32x32xbf16, #tpu.memory_space<vmem>>, %arg6: memref<1x32xf32, #tpu.memory_space<vmem>>, %arg7: memref<1x32xf32, #tpu.memory_space<vmem>>, %arg8: memref<1x32xf32, #tpu.memory_space<vmem>>, %arg9: memref<32x96xbf16, #tpu.memory_space<vmem>>, %arg10: memref<1x96xf32, #tpu.memory_space<vmem>>, %arg11: memref<32x32xbf16, #tpu.memory_space<vmem>>, %arg12: memref<1x32xf32, #tpu.memory_space<vmem>>, %arg13: memref<1x32xf32, #tpu.memory_space<vmem>>, %arg14: memref<1x32xf32, #tpu.memory_space<vmem>>, %arg15: memref<32x64xbf16, #tpu.memory_space<vmem>>, %arg16: memref<1x64xf32, #tpu.memory_space<vmem>>, %arg17: memref<64x32xbf16, #tpu.memory_space<vmem>>, %arg18: memref<1x32xf32, #tpu.memory_space<vmem>>, %arg19: memref<1x32xf32, #tpu.memory_space<vmem>>, %arg20: memref<1x32xf32, #tpu.memory_space<vmem>>, %arg21: memref<1x8x32xf32, #tpu.memory_space<vmem>>) attributes {dimension_semantics = [#tpu.dimension_semantics<parallel>], iteration_bounds = array<i64: 2>, scalar_prefetch = 0 : i64, scratch_operands = 0 : i64, tpu.core_type = #tpu.core_type<tc>, window_params = [{transform_indices = @transform_0, window_bounds = array<i64: 1, 8, 32>}, {transform_indices = @transform_1, window_bounds = array<i64: 1, 8, 32>}, {pipeline_mode = #tpu.pipeline_mode<synchronous>, transform_indices = @transform_2, window_bounds = array<i64: 32, 96>}, {pipeline_mode = #tpu.pipeline_mode<synchronous>, transform_indices = @transform_3, window_bounds = array<i64: 1, 96>}, {pipeline_mode = #tpu.pipeline_mode<synchronous>, transform_indices = @transform_4, window_bounds = array<i64: 32, 32>}, {pipeline_mode = #tpu.pipeline_mode<synchronous>, transform_indices = @transform_5, window_bounds = array<i64: 1, 32>}, {pipeline_mode = #tpu.pipeline_mode<synchronous>, transform_indices = @transform_6, window_bounds = array<i64: 1, 32>}, {pipeline_mode = #tpu.pipeline_mode<synchronous>, transform_indices = @transform_7, window_bounds = array<i64: 1, 32>}, {pipeline_mode = #tpu.pipeline_mode<synchronous>, transform_indices = @transform_8, window_bounds = array<i64: 32, 96>}, {pipeline_mode = #tpu.pipeline_mode<synchronous>, transform_indices = @transform_9, window_bounds = array<i64: 1, 96>}, {pipeline_mode = #tpu.pipeline_mode<synchronous>, transform_indices = @transform_10, window_bounds = array<i64: 32, 32>}, {pipeline_mode = #tpu.pipeline_mode<synchronous>, transform_indices = @transform_11, window_bounds = array<i64: 1, 32>}, {pipeline_mode = #tpu.pipeline_mode<synchronous>, transform_indices = @transform_12, window_bounds = array<i64: 1, 32>}, {pipeline_mode = #tpu.pipeline_mode<synchronous>, transform_indices = @transform_13, window_bounds = array<i64: 1, 32>}, {pipeline_mode = #tpu.pipeline_mode<synchronous>, transform_indices = @transform_14, window_bounds = array<i64: 32, 64>}, {pipeline_mode = #tpu.pipeline_mode<synchronous>, transform_indices = @transform_15, window_bounds = array<i64: 1, 64>}, {pipeline_mode = #tpu.pipeline_mode<synchronous>, transform_indices = @transform_16, window_bounds = array<i64: 64, 32>}, {pipeline_mode = #tpu.pipeline_mode<synchronous>, transform_indices = @transform_17, window_bounds = array<i64: 1, 32>}, {pipeline_mode = #tpu.pipeline_mode<synchronous>, transform_indices = @transform_18, window_bounds = array<i64: 1, 32>}, {pipeline_mode = #tpu.pipeline_mode<synchronous>, transform_indices = @transform_19, window_bounds = array<i64: 1, 32>}, {transform_indices = @transform_20, window_bounds = array<i64: 1, 8, 32>}]} {
    %c0 = arith.constant 0 : index
    %c0_0 = arith.constant 0 : index
    %c0_1 = arith.constant 0 : index
    %0 = vector.load %arg1[%c0, %c0_0, %c0_1] : memref<1x8x32xf32, #tpu.memory_space<vmem>>, vector<1x8x32xf32>
    %1 = vector.shape_cast %0 : vector<1x8x32xf32> to vector<8x32xf32>
    %c0_2 = arith.constant 0 : index
    %c0_3 = arith.constant 0 : index
    %c0_4 = arith.constant 0 : index
    %2 = vector.load %arg2[%c0_2, %c0_3, %c0_4] : memref<1x8x32xf32, #tpu.memory_space<vmem>>, vector<1x8x32xf32>
    %3 = vector.shape_cast %2 : vector<1x8x32xf32> to vector<8x32xf32>
    %4 = arith.truncf %1 : vector<8x32xf32> to vector<8x32xbf16>
    %c0_5 = arith.constant 0 : index
    %c0_6 = arith.constant 0 : index
    %5 = vector.load %arg3[%c0_5, %c0_6] : memref<32x96xbf16, #tpu.memory_space<vmem>>, vector<32x96xbf16>
    %cst = arith.constant dense<0.000000e+00> : vector<8x96xf32>
    %6 = tpu.matmul %4, %5, %cst {dimension_numbers = #tpu.dot_dimension_numbers<[1], [0], [0], [1], [0, 0, 1, 1], [], []>} : vector<8x32xbf16>, vector<32x96xbf16>, vector<8x96xf32> -> vector<8x96xf32>
    %c0_7 = arith.constant 0 : index
    %c0_8 = arith.constant 0 : index
    %7 = vector.load %arg4[%c0_7, %c0_8] : memref<1x96xf32, #tpu.memory_space<vmem>>, vector<1x96xf32>
    %8 = vector.broadcast %7 : vector<1x96xf32> to vector<8x96xf32>
    %9 = arith.addf %6, %8 : vector<8x96xf32>
    %10 = vector.extract_strided_slice %9 {offsets = [0, 0], sizes = [8, 32], strides = [1, 1]} : vector<8x96xf32> to vector<8x32xf32>
    %11 = vector.extract_strided_slice %9 {offsets = [0, 32], sizes = [8, 32], strides = [1, 1]} : vector<8x96xf32> to vector<8x32xf32>
    %12 = vector.extract_strided_slice %9 {offsets = [0, 64], sizes = [8, 32], strides = [1, 1]} : vector<8x96xf32> to vector<8x32xf32>
    %c0_9 = arith.constant 0 : index
    %c0_10 = arith.constant 0 : index
    %13 = vector.load %arg5[%c0_9, %c0_10] : memref<32x32xbf16, #tpu.memory_space<vmem>>, vector<32x32xbf16>
    %c0_11 = arith.constant 0 : index
    %c0_12 = arith.constant 0 : index
    %14 = vector.load %arg6[%c0_11, %c0_12] : memref<1x32xf32, #tpu.memory_space<vmem>>, vector<1x32xf32>
    %cst_13 = arith.constant 0.353553385 : f32
    %15 = vector.broadcast %cst_13 : f32 to vector<8x32xf32>
    %16 = arith.mulf %10, %15 : vector<8x32xf32>
    %17 = vector.extract_strided_slice %16 {offsets = [0, 0], sizes = [8, 8], strides = [1, 1]} : vector<8x32xf32> to vector<8x8xf32>
    %18 = vector.extract_strided_slice %16 {offsets = [0, 8], sizes = [8, 8], strides = [1, 1]} : vector<8x32xf32> to vector<8x8xf32>
    %19 = vector.extract_strided_slice %16 {offsets = [0, 16], sizes = [8, 8], strides = [1, 1]} : vector<8x32xf32> to vector<8x8xf32>
    %20 = vector.extract_strided_slice %16 {offsets = [0, 24], sizes = [8, 8], strides = [1, 1]} : vector<8x32xf32> to vector<8x8xf32>
    %21 = vector.shape_cast %17 : vector<8x8xf32> to vector<1x8x8xf32>
    %22 = vector.shape_cast %18 : vector<8x8xf32> to vector<1x8x8xf32>
    %23 = vector.shape_cast %19 : vector<8x8xf32> to vector<1x8x8xf32>
    %24 = vector.shape_cast %20 : vector<8x8xf32> to vector<1x8x8xf32>
    %25 = tpu.concatenate %21, %22, %23, %24 in 0 : vector<1x8x8xf32>, vector<1x8x8xf32>, vector<1x8x8xf32>, vector<1x8x8xf32> -> vector<4x8x8xf32>
    %26 = arith.truncf %25 : vector<4x8x8xf32> to vector<4x8x8xbf16>
    %27 = vector.extract_strided_slice %11 {offsets = [0, 0], sizes = [8, 8], strides = [1, 1]} : vector<8x32xf32> to vector<8x8xf32>
    %28 = vector.extract_strided_slice %11 {offsets = [0, 8], sizes = [8, 8], strides = [1, 1]} : vector<8x32xf32> to vector<8x8xf32>
    %29 = vector.extract_strided_slice %11 {offsets = [0, 16], sizes = [8, 8], strides = [1, 1]} : vector<8x32xf32> to vector<8x8xf32>
    %30 = vector.extract_strided_slice %11 {offsets = [0, 24], sizes = [8, 8], strides = [1, 1]} : vector<8x32xf32> to vector<8x8xf32>
    %31 = vector.shape_cast %27 : vector<8x8xf32> to vector<1x8x8xf32>
    %32 = vector.shape_cast %28 : vector<8x8xf32> to vector<1x8x8xf32>
    %33 = vector.shape_cast %29 : vector<8x8xf32> to vector<1x8x8xf32>
    %34 = vector.shape_cast %30 : vector<8x8xf32> to vector<1x8x8xf32>
    %35 = tpu.concatenate %31, %32, %33, %34 in 0 : vector<1x8x8xf32>, vector<1x8x8xf32>, vector<1x8x8xf32>, vector<1x8x8xf32> -> vector<4x8x8xf32>
    %36 = arith.truncf %35 : vector<4x8x8xf32> to vector<4x8x8xbf16>
    %37 = vector.extract_strided_slice %12 {offsets = [0, 0], sizes = [8, 8], strides = [1, 1]} : vector<8x32xf32> to vector<8x8xf32>
    %38 = vector.extract_strided_slice %12 {offsets = [0, 8], sizes = [8, 8], strides = [1, 1]} : vector<8x32xf32> to vector<8x8xf32>
    %39 = vector.extract_strided_slice %12 {offsets = [0, 16], sizes = [8, 8], strides = [1, 1]} : vector<8x32xf32> to vector<8x8xf32>
    %40 = vector.extract_strided_slice %12 {offsets = [0, 24], sizes = [8, 8], strides = [1, 1]} : vector<8x32xf32> to vector<8x8xf32>
    %41 = vector.shape_cast %37 : vector<8x8xf32> to vector<1x8x8xf32>
    %42 = vector.shape_cast %38 : vector<8x8xf32> to vector<1x8x8xf32>
    %43 = vector.shape_cast %39 : vector<8x8xf32> to vector<1x8x8xf32>
    %44 = vector.shape_cast %40 : vector<8x8xf32> to vector<1x8x8xf32>
    %45 = tpu.concatenate %41, %42, %43, %44 in 0 : vector<1x8x8xf32>, vector<1x8x8xf32>, vector<1x8x8xf32>, vector<1x8x8xf32> -> vector<4x8x8xf32>
    %46 = arith.truncf %45 : vector<4x8x8xf32> to vector<4x8x8xbf16>
    "tpu.trace_start"() <{level = 10 : i32, message = "hqd,hkd->hqk"}> : () -> ()
    %cst_14 = arith.constant dense<0.000000e+00> : vector<4x8x8xf32>
    %47 = tpu.matmul %26, %36, %cst_14 {dimension_numbers = #tpu.dot_dimension_numbers<[2], [2], [1], [1], [0, 0, 0, 1, 1, 1], [0], [0]>} : vector<4x8x8xbf16>, vector<4x8x8xbf16>, vector<4x8x8xf32> -> vector<4x8x8xf32>
    "tpu.trace_stop"() : () -> ()
    %cst_15 = arith.constant dense<0xFF800000> : vector<4x8xf32>
    %48 = vector.multi_reduction <maximumf>, %47, %cst_15 [2] : vector<4x8x8xf32> to vector<4x8xf32>
    %49 = vector.shape_cast %48 : vector<4x8xf32> to vector<4x8x1xf32>
    %50 = vector.broadcast %49 : vector<4x8x1xf32> to vector<4x8x8xf32>
    %51 = arith.subf %47, %50 : vector<4x8x8xf32>
    %52 = math.exp %51 : vector<4x8x8xf32>
    %cst_16 = arith.constant dense<0.000000e+00> : vector<4x8xf32>
    %53 = vector.multi_reduction <add>, %52, %cst_16 [2] : vector<4x8x8xf32> to vector<4x8xf32>
    %54 = vector.shape_cast %53 : vector<4x8xf32> to vector<4x8x1xf32>
    %55 = tpu.reciprocal %54 {approx = true} : vector<4x8x1xf32> -> vector<4x8x1xf32>
    %56 = vector.broadcast %55 : vector<4x8x1xf32> to vector<4x8x8xf32>
    %57 = arith.mulf %52, %56 : vector<4x8x8xf32>
    %58 = arith.truncf %57 : vector<4x8x8xf32> to vector<4x8x8xbf16>
    "tpu.trace_start"() <{level = 10 : i32, message = "hqk,hkd->hqd"}> : () -> ()
    %cst_17 = arith.constant dense<0.000000e+00> : vector<4x8x8xf32>
    %59 = tpu.matmul %58, %46, %cst_17 {dimension_numbers = #tpu.dot_dimension_numbers<[2], [1], [1], [2], [0, 0, 0, 1, 1, 2], [0], [0]>} : vector<4x8x8xbf16>, vector<4x8x8xbf16>, vector<4x8x8xf32> -> vector<4x8x8xf32>
    "tpu.trace_stop"() : () -> ()
    %60 = vector.extract_strided_slice %59 {offsets = [0, 0, 0], sizes = [1, 8, 8], strides = [1, 1, 1]} : vector<4x8x8xf32> to vector<1x8x8xf32>
    %61 = vector.shape_cast %60 : vector<1x8x8xf32> to vector<8x8xf32>
    %62 = vector.extract_strided_slice %59 {offsets = [1, 0, 0], sizes = [1, 8, 8], strides = [1, 1, 1]} : vector<4x8x8xf32> to vector<1x8x8xf32>
    %63 = vector.shape_cast %62 : vector<1x8x8xf32> to vector<8x8xf32>
    %64 = vector.extract_strided_slice %59 {offsets = [2, 0, 0], sizes = [1, 8, 8], strides = [1, 1, 1]} : vector<4x8x8xf32> to vector<1x8x8xf32>
    %65 = vector.shape_cast %64 : vector<1x8x8xf32> to vector<8x8xf32>
    %66 = vector.extract_strided_slice %59 {offsets = [3, 0, 0], sizes = [1, 8, 8], strides = [1, 1, 1]} : vector<4x8x8xf32> to vector<1x8x8xf32>
    %67 = vector.shape_cast %66 : vector<1x8x8xf32> to vector<8x8xf32>
    %68 = tpu.concatenate %61, %63, %65, %67 in 1 : vector<8x8xf32>, vector<8x8xf32>, vector<8x8xf32>, vector<8x8xf32> -> vector<8x32xf32>
    %69 = arith.truncf %68 : vector<8x32xf32> to vector<8x32xbf16>
    %cst_18 = arith.constant dense<0.000000e+00> : vector<8x32xf32>
    %70 = tpu.matmul %69, %13, %cst_18 {dimension_numbers = #tpu.dot_dimension_numbers<[1], [0], [0], [1], [0, 0, 1, 1], [], []>} : vector<8x32xbf16>, vector<32x32xbf16>, vector<8x32xf32> -> vector<8x32xf32>
    %71 = vector.broadcast %14 : vector<1x32xf32> to vector<8x32xf32>
    %72 = arith.addf %70, %71 : vector<8x32xf32>
    %73 = arith.addf %1, %72 : vector<8x32xf32>
    %c0_19 = arith.constant 0 : index
    %c0_20 = arith.constant 0 : index
    %74 = vector.load %arg7[%c0_19, %c0_20] : memref<1x32xf32, #tpu.memory_space<vmem>>, vector<1x32xf32>
    %c0_21 = arith.constant 0 : index
    %c0_22 = arith.constant 0 : index
    %75 = vector.load %arg8[%c0_21, %c0_22] : memref<1x32xf32, #tpu.memory_space<vmem>>, vector<1x32xf32>
    %cst_23 = arith.constant dense<0.000000e+00> : vector<8xf32>
    %76 = vector.multi_reduction <add>, %73, %cst_23 [1] : vector<8x32xf32> to vector<8xf32>
    %77 = vector.shape_cast %76 : vector<8xf32> to vector<8x1xf32>
    %cst_24 = arith.constant 3.200000e+01 : f32
    %78 = vector.broadcast %cst_24 : f32 to vector<8x1xf32>
    %79 = arith.divf %77, %78 : vector<8x1xf32>
    %80 = vector.broadcast %79 : vector<8x1xf32> to vector<8x32xf32>
    %81 = arith.subf %73, %80 : vector<8x32xf32>
    %82 = arith.mulf %81, %81 : vector<8x32xf32>
    %cst_25 = arith.constant dense<0.000000e+00> : vector<8xf32>
    %83 = vector.multi_reduction <add>, %82, %cst_25 [1] : vector<8x32xf32> to vector<8xf32>
    %84 = vector.shape_cast %83 : vector<8xf32> to vector<8x1xf32>
    %cst_26 = arith.constant 3.200000e+01 : f32
    %85 = vector.broadcast %cst_26 : f32 to vector<8x1xf32>
    %86 = arith.divf %84, %85 : vector<8x1xf32>
    %87 = vector.broadcast %79 : vector<8x1xf32> to vector<8x32xf32>
    %88 = arith.subf %73, %87 : vector<8x32xf32>
    %cst_27 = arith.constant 9.99999974E-6 : f32
    %89 = vector.broadcast %cst_27 : f32 to vector<8x1xf32>
    %90 = arith.addf %86, %89 : vector<8x1xf32>
    %91 = math.rsqrt %90 : vector<8x1xf32>
    %92 = vector.broadcast %91 : vector<8x1xf32> to vector<8x32xf32>
    %93 = arith.mulf %88, %92 : vector<8x32xf32>
    %94 = vector.broadcast %74 : vector<1x32xf32> to vector<8x32xf32>
    %95 = arith.mulf %93, %94 : vector<8x32xf32>
    %96 = vector.broadcast %75 : vector<1x32xf32> to vector<8x32xf32>
    %97 = arith.addf %95, %96 : vector<8x32xf32>
    %c0_28 = arith.constant 0 : index
    %c0_29 = arith.constant 0 : index
    %98 = vector.load %arg9[%c0_28, %c0_29] : memref<32x96xbf16, #tpu.memory_space<vmem>>, vector<32x96xbf16>
    %c0_30 = arith.constant 0 : index
    %c0_31 = arith.constant 0 : index
    %99 = vector.load %arg10[%c0_30, %c0_31] : memref<1x96xf32, #tpu.memory_space<vmem>>, vector<1x96xf32>
    %100 = arith.truncf %97 : vector<8x32xf32> to vector<8x32xbf16>
    %101 = vector.extract_strided_slice %98 {offsets = [0, 0], sizes = [32, 32], strides = [1, 1]} : vector<32x96xbf16> to vector<32x32xbf16>
    %cst_32 = arith.constant dense<0.000000e+00> : vector<8x32xf32>
    %102 = tpu.matmul %100, %101, %cst_32 {dimension_numbers = #tpu.dot_dimension_numbers<[1], [0], [0], [1], [0, 0, 1, 1], [], []>} : vector<8x32xbf16>, vector<32x32xbf16>, vector<8x32xf32> -> vector<8x32xf32>
    %103 = vector.extract_strided_slice %99 {offsets = [0, 0], sizes = [1, 32], strides = [1, 1]} : vector<1x96xf32> to vector<1x32xf32>
    %104 = vector.broadcast %103 : vector<1x32xf32> to vector<8x32xf32>
    %105 = arith.addf %102, %104 : vector<8x32xf32>
    %106 = arith.truncf %3 : vector<8x32xf32> to vector<8x32xbf16>
    %107 = vector.extract_strided_slice %98 {offsets = [0, 32], sizes = [32, 64], strides = [1, 1]} : vector<32x96xbf16> to vector<32x64xbf16>
    %cst_33 = arith.constant dense<0.000000e+00> : vector<8x64xf32>
    %108 = tpu.matmul %106, %107, %cst_33 {dimension_numbers = #tpu.dot_dimension_numbers<[1], [0], [0], [1], [0, 0, 1, 1], [], []>} : vector<8x32xbf16>, vector<32x64xbf16>, vector<8x64xf32> -> vector<8x64xf32>
    %109 = vector.extract_strided_slice %99 {offsets = [0, 32], sizes = [1, 64], strides = [1, 1]} : vector<1x96xf32> to vector<1x64xf32>
    %110 = vector.broadcast %109 : vector<1x64xf32> to vector<8x64xf32>
    %111 = arith.addf %108, %110 : vector<8x64xf32>
    %112 = vector.extract_strided_slice %111 {offsets = [0, 0], sizes = [8, 32], strides = [1, 1]} : vector<8x64xf32> to vector<8x32xf32>
    %113 = vector.extract_strided_slice %111 {offsets = [0, 32], sizes = [8, 32], strides = [1, 1]} : vector<8x64xf32> to vector<8x32xf32>
    %c0_34 = arith.constant 0 : index
    %c0_35 = arith.constant 0 : index
    %114 = vector.load %arg11[%c0_34, %c0_35] : memref<32x32xbf16, #tpu.memory_space<vmem>>, vector<32x32xbf16>
    %c0_36 = arith.constant 0 : index
    %c0_37 = arith.constant 0 : index
    %115 = vector.load %arg12[%c0_36, %c0_37] : memref<1x32xf32, #tpu.memory_space<vmem>>, vector<1x32xf32>
    %cst_38 = arith.constant 0.353553385 : f32
    %116 = vector.broadcast %cst_38 : f32 to vector<8x32xf32>
    %117 = arith.mulf %105, %116 : vector<8x32xf32>
    %118 = vector.extract_strided_slice %117 {offsets = [0, 0], sizes = [8, 8], strides = [1, 1]} : vector<8x32xf32> to vector<8x8xf32>
    %119 = vector.extract_strided_slice %117 {offsets = [0, 8], sizes = [8, 8], strides = [1, 1]} : vector<8x32xf32> to vector<8x8xf32>
    %120 = vector.extract_strided_slice %117 {offsets = [0, 16], sizes = [8, 8], strides = [1, 1]} : vector<8x32xf32> to vector<8x8xf32>
    %121 = vector.extract_strided_slice %117 {offsets = [0, 24], sizes = [8, 8], strides = [1, 1]} : vector<8x32xf32> to vector<8x8xf32>
    %122 = vector.shape_cast %118 : vector<8x8xf32> to vector<1x8x8xf32>
    %123 = vector.shape_cast %119 : vector<8x8xf32> to vector<1x8x8xf32>
    %124 = vector.shape_cast %120 : vector<8x8xf32> to vector<1x8x8xf32>
    %125 = vector.shape_cast %121 : vector<8x8xf32> to vector<1x8x8xf32>
    %126 = tpu.concatenate %122, %123, %124, %125 in 0 : vector<1x8x8xf32>, vector<1x8x8xf32>, vector<1x8x8xf32>, vector<1x8x8xf32> -> vector<4x8x8xf32>
    %127 = arith.truncf %126 : vector<4x8x8xf32> to vector<4x8x8xbf16>
    %128 = vector.extract_strided_slice %112 {offsets = [0, 0], sizes = [8, 8], strides = [1, 1]} : vector<8x32xf32> to vector<8x8xf32>
    %129 = vector.extract_strided_slice %112 {offsets = [0, 8], sizes = [8, 8], strides = [1, 1]} : vector<8x32xf32> to vector<8x8xf32>
    %130 = vector.extract_strided_slice %112 {offsets = [0, 16], sizes = [8, 8], strides = [1, 1]} : vector<8x32xf32> to vector<8x8xf32>
    %131 = vector.extract_strided_slice %112 {offsets = [0, 24], sizes = [8, 8], strides = [1, 1]} : vector<8x32xf32> to vector<8x8xf32>
    %132 = vector.shape_cast %128 : vector<8x8xf32> to vector<1x8x8xf32>
    %133 = vector.shape_cast %129 : vector<8x8xf32> to vector<1x8x8xf32>
    %134 = vector.shape_cast %130 : vector<8x8xf32> to vector<1x8x8xf32>
    %135 = vector.shape_cast %131 : vector<8x8xf32> to vector<1x8x8xf32>
    %136 = tpu.concatenate %132, %133, %134, %135 in 0 : vector<1x8x8xf32>, vector<1x8x8xf32>, vector<1x8x8xf32>, vector<1x8x8xf32> -> vector<4x8x8xf32>
    %137 = arith.truncf %136 : vector<4x8x8xf32> to vector<4x8x8xbf16>
    %138 = vector.extract_strided_slice %113 {offsets = [0, 0], sizes = [8, 8], strides = [1, 1]} : vector<8x32xf32> to vector<8x8xf32>
    %139 = vector.extract_strided_slice %113 {offsets = [0, 8], sizes = [8, 8], strides = [1, 1]} : vector<8x32xf32> to vector<8x8xf32>
    %140 = vector.extract_strided_slice %113 {offsets = [0, 16], sizes = [8, 8], strides = [1, 1]} : vector<8x32xf32> to vector<8x8xf32>
    %141 = vector.extract_strided_slice %113 {offsets = [0, 24], sizes = [8, 8], strides = [1, 1]} : vector<8x32xf32> to vector<8x8xf32>
    %142 = vector.shape_cast %138 : vector<8x8xf32> to vector<1x8x8xf32>
    %143 = vector.shape_cast %139 : vector<8x8xf32> to vector<1x8x8xf32>
    %144 = vector.shape_cast %140 : vector<8x8xf32> to vector<1x8x8xf32>
    %145 = vector.shape_cast %141 : vector<8x8xf32> to vector<1x8x8xf32>
    %146 = tpu.concatenate %142, %143, %144, %145 in 0 : vector<1x8x8xf32>, vector<1x8x8xf32>, vector<1x8x8xf32>, vector<1x8x8xf32> -> vector<4x8x8xf32>
    %147 = arith.truncf %146 : vector<4x8x8xf32> to vector<4x8x8xbf16>
    "tpu.trace_start"() <{level = 10 : i32, message = "hqd,hkd->hqk"}> : () -> ()
    %cst_39 = arith.constant dense<0.000000e+00> : vector<4x8x8xf32>
    %148 = tpu.matmul %127, %137, %cst_39 {dimension_numbers = #tpu.dot_dimension_numbers<[2], [2], [1], [1], [0, 0, 0, 1, 1, 1], [0], [0]>} : vector<4x8x8xbf16>, vector<4x8x8xbf16>, vector<4x8x8xf32> -> vector<4x8x8xf32>
    "tpu.trace_stop"() : () -> ()
    %cst_40 = arith.constant dense<0xFF800000> : vector<4x8xf32>
    %149 = vector.multi_reduction <maximumf>, %148, %cst_40 [2] : vector<4x8x8xf32> to vector<4x8xf32>
    %150 = vector.shape_cast %149 : vector<4x8xf32> to vector<4x8x1xf32>
    %151 = vector.broadcast %150 : vector<4x8x1xf32> to vector<4x8x8xf32>
    %152 = arith.subf %148, %151 : vector<4x8x8xf32>
    %153 = math.exp %152 : vector<4x8x8xf32>
    %cst_41 = arith.constant dense<0.000000e+00> : vector<4x8xf32>
    %154 = vector.multi_reduction <add>, %153, %cst_41 [2] : vector<4x8x8xf32> to vector<4x8xf32>
    %155 = vector.shape_cast %154 : vector<4x8xf32> to vector<4x8x1xf32>
    %156 = tpu.reciprocal %155 {approx = true} : vector<4x8x1xf32> -> vector<4x8x1xf32>
    %157 = vector.broadcast %156 : vector<4x8x1xf32> to vector<4x8x8xf32>
    %158 = arith.mulf %153, %157 : vector<4x8x8xf32>
    %159 = arith.truncf %158 : vector<4x8x8xf32> to vector<4x8x8xbf16>
    "tpu.trace_start"() <{level = 10 : i32, message = "hqk,hkd->hqd"}> : () -> ()
    %cst_42 = arith.constant dense<0.000000e+00> : vector<4x8x8xf32>
    %160 = tpu.matmul %159, %147, %cst_42 {dimension_numbers = #tpu.dot_dimension_numbers<[2], [1], [1], [2], [0, 0, 0, 1, 1, 2], [0], [0]>} : vector<4x8x8xbf16>, vector<4x8x8xbf16>, vector<4x8x8xf32> -> vector<4x8x8xf32>
    "tpu.trace_stop"() : () -> ()
    %161 = vector.extract_strided_slice %160 {offsets = [0, 0, 0], sizes = [1, 8, 8], strides = [1, 1, 1]} : vector<4x8x8xf32> to vector<1x8x8xf32>
    %162 = vector.shape_cast %161 : vector<1x8x8xf32> to vector<8x8xf32>
    %163 = vector.extract_strided_slice %160 {offsets = [1, 0, 0], sizes = [1, 8, 8], strides = [1, 1, 1]} : vector<4x8x8xf32> to vector<1x8x8xf32>
    %164 = vector.shape_cast %163 : vector<1x8x8xf32> to vector<8x8xf32>
    %165 = vector.extract_strided_slice %160 {offsets = [2, 0, 0], sizes = [1, 8, 8], strides = [1, 1, 1]} : vector<4x8x8xf32> to vector<1x8x8xf32>
    %166 = vector.shape_cast %165 : vector<1x8x8xf32> to vector<8x8xf32>
    %167 = vector.extract_strided_slice %160 {offsets = [3, 0, 0], sizes = [1, 8, 8], strides = [1, 1, 1]} : vector<4x8x8xf32> to vector<1x8x8xf32>
    %168 = vector.shape_cast %167 : vector<1x8x8xf32> to vector<8x8xf32>
    %169 = tpu.concatenate %162, %164, %166, %168 in 1 : vector<8x8xf32>, vector<8x8xf32>, vector<8x8xf32>, vector<8x8xf32> -> vector<8x32xf32>
    %170 = arith.truncf %169 : vector<8x32xf32> to vector<8x32xbf16>
    %cst_43 = arith.constant dense<0.000000e+00> : vector<8x32xf32>
    %171 = tpu.matmul %170, %114, %cst_43 {dimension_numbers = #tpu.dot_dimension_numbers<[1], [0], [0], [1], [0, 0, 1, 1], [], []>} : vector<8x32xbf16>, vector<32x32xbf16>, vector<8x32xf32> -> vector<8x32xf32>
    %172 = vector.broadcast %115 : vector<1x32xf32> to vector<8x32xf32>
    %173 = arith.addf %171, %172 : vector<8x32xf32>
    %174 = arith.addf %97, %173 : vector<8x32xf32>
    %c0_44 = arith.constant 0 : index
    %c0_45 = arith.constant 0 : index
    %175 = vector.load %arg13[%c0_44, %c0_45] : memref<1x32xf32, #tpu.memory_space<vmem>>, vector<1x32xf32>
    %c0_46 = arith.constant 0 : index
    %c0_47 = arith.constant 0 : index
    %176 = vector.load %arg14[%c0_46, %c0_47] : memref<1x32xf32, #tpu.memory_space<vmem>>, vector<1x32xf32>
    %cst_48 = arith.constant dense<0.000000e+00> : vector<8xf32>
    %177 = vector.multi_reduction <add>, %174, %cst_48 [1] : vector<8x32xf32> to vector<8xf32>
    %178 = vector.shape_cast %177 : vector<8xf32> to vector<8x1xf32>
    %cst_49 = arith.constant 3.200000e+01 : f32
    %179 = vector.broadcast %cst_49 : f32 to vector<8x1xf32>
    %180 = arith.divf %178, %179 : vector<8x1xf32>
    %181 = vector.broadcast %180 : vector<8x1xf32> to vector<8x32xf32>
    %182 = arith.subf %174, %181 : vector<8x32xf32>
    %183 = arith.mulf %182, %182 : vector<8x32xf32>
    %cst_50 = arith.constant dense<0.000000e+00> : vector<8xf32>
    %184 = vector.multi_reduction <add>, %183, %cst_50 [1] : vector<8x32xf32> to vector<8xf32>
    %185 = vector.shape_cast %184 : vector<8xf32> to vector<8x1xf32>
    %cst_51 = arith.constant 3.200000e+01 : f32
    %186 = vector.broadcast %cst_51 : f32 to vector<8x1xf32>
    %187 = arith.divf %185, %186 : vector<8x1xf32>
    %188 = vector.broadcast %180 : vector<8x1xf32> to vector<8x32xf32>
    %189 = arith.subf %174, %188 : vector<8x32xf32>
    %cst_52 = arith.constant 9.99999974E-6 : f32
    %190 = vector.broadcast %cst_52 : f32 to vector<8x1xf32>
    %191 = arith.addf %187, %190 : vector<8x1xf32>
    %192 = math.rsqrt %191 : vector<8x1xf32>
    %193 = vector.broadcast %192 : vector<8x1xf32> to vector<8x32xf32>
    %194 = arith.mulf %189, %193 : vector<8x32xf32>
    %195 = vector.broadcast %175 : vector<1x32xf32> to vector<8x32xf32>
    %196 = arith.mulf %194, %195 : vector<8x32xf32>
    %197 = vector.broadcast %176 : vector<1x32xf32> to vector<8x32xf32>
    %198 = arith.addf %196, %197 : vector<8x32xf32>
    %199 = arith.truncf %198 : vector<8x32xf32> to vector<8x32xbf16>
    %c0_53 = arith.constant 0 : index
    %c0_54 = arith.constant 0 : index
    %200 = vector.load %arg15[%c0_53, %c0_54] : memref<32x64xbf16, #tpu.memory_space<vmem>>, vector<32x64xbf16>
    %cst_55 = arith.constant dense<0.000000e+00> : vector<8x64xf32>
    %201 = tpu.matmul %199, %200, %cst_55 {dimension_numbers = #tpu.dot_dimension_numbers<[1], [0], [0], [1], [0, 0, 1, 1], [], []>} : vector<8x32xbf16>, vector<32x64xbf16>, vector<8x64xf32> -> vector<8x64xf32>
    %c0_56 = arith.constant 0 : index
    %c0_57 = arith.constant 0 : index
    %202 = vector.load %arg16[%c0_56, %c0_57] : memref<1x64xf32, #tpu.memory_space<vmem>>, vector<1x64xf32>
    %203 = vector.broadcast %202 : vector<1x64xf32> to vector<8x64xf32>
    %204 = arith.addf %201, %203 : vector<8x64xf32>
    %cst_58 = arith.constant 0.000000e+00 : f32
    %205 = vector.broadcast %cst_58 : f32 to vector<8x64xf32>
    %206 = arith.maximumf %204, %205 : vector<8x64xf32>
    %207 = arith.truncf %206 : vector<8x64xf32> to vector<8x64xbf16>
    %c0_59 = arith.constant 0 : index
    %c0_60 = arith.constant 0 : index
    %208 = vector.load %arg17[%c0_59, %c0_60] : memref<64x32xbf16, #tpu.memory_space<vmem>>, vector<64x32xbf16>
    %cst_61 = arith.constant dense<0.000000e+00> : vector<8x32xf32>
    %209 = tpu.matmul %207, %208, %cst_61 {dimension_numbers = #tpu.dot_dimension_numbers<[1], [0], [0], [1], [0, 0, 1, 1], [], []>} : vector<8x64xbf16>, vector<64x32xbf16>, vector<8x32xf32> -> vector<8x32xf32>
    %c0_62 = arith.constant 0 : index
    %c0_63 = arith.constant 0 : index
    %210 = vector.load %arg18[%c0_62, %c0_63] : memref<1x32xf32, #tpu.memory_space<vmem>>, vector<1x32xf32>
    %211 = vector.broadcast %210 : vector<1x32xf32> to vector<8x32xf32>
    %212 = arith.addf %209, %211 : vector<8x32xf32>
    %213 = arith.addf %198, %212 : vector<8x32xf32>
    %c0_64 = arith.constant 0 : index
    %c0_65 = arith.constant 0 : index
    %214 = vector.load %arg19[%c0_64, %c0_65] : memref<1x32xf32, #tpu.memory_space<vmem>>, vector<1x32xf32>
    %c0_66 = arith.constant 0 : index
    %c0_67 = arith.constant 0 : index
    %215 = vector.load %arg20[%c0_66, %c0_67] : memref<1x32xf32, #tpu.memory_space<vmem>>, vector<1x32xf32>
    %cst_68 = arith.constant dense<0.000000e+00> : vector<8xf32>
    %216 = vector.multi_reduction <add>, %213, %cst_68 [1] : vector<8x32xf32> to vector<8xf32>
    %217 = vector.shape_cast %216 : vector<8xf32> to vector<8x1xf32>
    %cst_69 = arith.constant 3.200000e+01 : f32
    %218 = vector.broadcast %cst_69 : f32 to vector<8x1xf32>
    %219 = arith.divf %217, %218 : vector<8x1xf32>
    %220 = vector.broadcast %219 : vector<8x1xf32> to vector<8x32xf32>
    %221 = arith.subf %213, %220 : vector<8x32xf32>
    %222 = arith.mulf %221, %221 : vector<8x32xf32>
    %cst_70 = arith.constant dense<0.000000e+00> : vector<8xf32>
    %223 = vector.multi_reduction <add>, %222, %cst_70 [1] : vector<8x32xf32> to vector<8xf32>
    %224 = vector.shape_cast %223 : vector<8xf32> to vector<8x1xf32>
    %cst_71 = arith.constant 3.200000e+01 : f32
    %225 = vector.broadcast %cst_71 : f32 to vector<8x1xf32>
    %226 = arith.divf %224, %225 : vector<8x1xf32>
    %227 = vector.broadcast %219 : vector<8x1xf32> to vector<8x32xf32>
    %228 = arith.subf %213, %227 : vector<8x32xf32>
    %cst_72 = arith.constant 9.99999974E-6 : f32
    %229 = vector.broadcast %cst_72 : f32 to vector<8x1xf32>
    %230 = arith.addf %226, %229 : vector<8x1xf32>
    %231 = math.rsqrt %230 : vector<8x1xf32>
    %232 = vector.broadcast %231 : vector<8x1xf32> to vector<8x32xf32>
    %233 = arith.mulf %228, %232 : vector<8x32xf32>
    %234 = vector.broadcast %214 : vector<1x32xf32> to vector<8x32xf32>
    %235 = arith.mulf %233, %234 : vector<8x32xf32>
    %236 = vector.broadcast %215 : vector<1x32xf32> to vector<8x32xf32>
    %237 = arith.addf %235, %236 : vector<8x32xf32>
    %c0_73 = arith.constant 0 : index
    %c0_74 = arith.constant 0 : index
    %c0_75 = arith.constant 0 : index
    %238 = vector.load %arg21[%c0_73, %c0_74, %c0_75] : memref<1x8x32xf32, #tpu.memory_space<vmem>>, vector<1x8x32xf32>
    %239 = vector.shape_cast %238 : vector<1x8x32xf32> to vector<8x32xf32>
    %240 = vector.shape_cast %237 : vector<8x32xf32> to vector<1x8x32xf32>
    tpu.vector_store %arg21[%c0_73, %c0_74, %c0_75], %240 {strides = array<i32>} : memref<1x8x32xf32, #tpu.memory_space<vmem>>, vector<1x8x32xf32>,
    return
  }
  func.func @transform_0(%arg0: i32) -> (i32, i32, i32) {
    %c0_i32 = arith.constant 0 : i32
    %c0_i32_0 = arith.constant 0 : i32
    %c0_i32_1 = arith.constant 0 : i32
    return %arg0, %c0_i32, %c0_i32_0 : i32, i32, i32
  }
  func.func @transform_1(%arg0: i32) -> (i32, i32, i32) {
    %c0_i32 = arith.constant 0 : i32
    %c0_i32_0 = arith.constant 0 : i32
    %c0_i32_1 = arith.constant 0 : i32
    return %arg0, %c0_i32, %c0_i32_0 : i32, i32, i32
  }
  func.func @transform_2(%arg0: i32) -> (i32, i32) {
    %c0_i32 = arith.constant 0 : i32
    %c0_i32_0 = arith.constant 0 : i32
    %c0_i32_1 = arith.constant 0 : i32
    return %c0_i32, %c0_i32_0 : i32, i32
  }
  func.func @transform_3(%arg0: i32) -> (i32, i32) {
    %c0_i32 = arith.constant 0 : i32
    %c0_i32_0 = arith.constant 0 : i32
    %c0_i32_1 = arith.constant 0 : i32
    return %c0_i32, %c0_i32_0 : i32, i32
  }
  func.func @transform_4(%arg0: i32) -> (i32, i32) {
    %c0_i32 = arith.constant 0 : i32
    %c0_i32_0 = arith.constant 0 : i32
    %c0_i32_1 = arith.constant 0 : i32
    return %c0_i32, %c0_i32_0 : i32, i32
  }
  func.func @transform_5(%arg0: i32) -> (i32, i32) {
    %c0_i32 = arith.constant 0 : i32
    %c0_i32_0 = arith.constant 0 : i32
    %c0_i32_1 = arith.constant 0 : i32
    return %c0_i32, %c0_i32_0 : i32, i32
  }
  func.func @transform_6(%arg0: i32) -> (i32, i32) {
    %c0_i32 = arith.constant 0 : i32
    %c0_i32_0 = arith.constant 0 : i32
    %c0_i32_1 = arith.constant 0 : i32
    return %c0_i32, %c0_i32_0 : i32, i32
  }
  func.func @transform_7(%arg0: i32) -> (i32, i32) {
    %c0_i32 = arith.constant 0 : i32
    %c0_i32_0 = arith.constant 0 : i32
    %c0_i32_1 = arith.constant 0 : i32
    return %c0_i32, %c0_i32_0 : i32, i32
  }
  func.func @transform_8(%arg0: i32) -> (i32, i32) {
    %c0_i32 = arith.constant 0 : i32
    %c0_i32_0 = arith.constant 0 : i32
    %c0_i32_1 = arith.constant 0 : i32
    return %c0_i32, %c0_i32_0 : i32, i32
  }
  func.func @transform_9(%arg0: i32) -> (i32, i32) {
    %c0_i32 = arith.constant 0 : i32
    %c0_i32_0 = arith.constant 0 : i32
    %c0_i32_1 = arith.constant 0 : i32
    return %c0_i32, %c0_i32_0 : i32, i32
  }
  func.func @transform_10(%arg0: i32) -> (i32, i32) {
    %c0_i32 = arith.constant 0 : i32
    %c0_i32_0 = arith.constant 0 : i32
    %c0_i32_1 = arith.constant 0 : i32
    return %c0_i32, %c0_i32_0 : i32, i32
  }
  func.func @transform_11(%arg0: i32) -> (i32, i32) {
    %c0_i32 = arith.constant 0 : i32
    %c0_i32_0 = arith.constant 0 : i32
    %c0_i32_1 = arith.constant 0 : i32
    return %c0_i32, %c0_i32_0 : i32, i32
  }
  func.func @transform_12(%arg0: i32) -> (i32, i32) {
    %c0_i32 = arith.constant 0 : i32
    %c0_i32_0 = arith.constant 0 : i32
    %c0_i32_1 = arith.constant 0 : i32
    return %c0_i32, %c0_i32_0 : i32, i32
  }
  func.func @transform_13(%arg0: i32) -> (i32, i32) {
    %c0_i32 = arith.constant 0 : i32
    %c0_i32_0 = arith.constant 0 : i32
    %c0_i32_1 = arith.constant 0 : i32
    return %c0_i32, %c0_i32_0 : i32, i32
  }
  func.func @transform_14(%arg0: i32) -> (i32, i32) {
    %c0_i32 = arith.constant 0 : i32
    %c0_i32_0 = arith.constant 0 : i32
    %c0_i32_1 = arith.constant 0 : i32
    return %c0_i32, %c0_i32_0 : i32, i32
  }
  func.func @transform_15(%arg0: i32) -> (i32, i32) {
    %c0_i32 = arith.constant 0 : i32
    %c0_i32_0 = arith.constant 0 : i32
    %c0_i32_1 = arith.constant 0 : i32
    return %c0_i32, %c0_i32_0 : i32, i32
  }
  func.func @transform_16(%arg0: i32) -> (i32, i32) {
    %c0_i32 = arith.constant 0 : i32
    %c0_i32_0 = arith.constant 0 : i32
    %c0_i32_1 = arith.constant 0 : i32
    return %c0_i32, %c0_i32_0 : i32, i32
  }
  func.func @transform_17(%arg0: i32) -> (i32, i32) {
    %c0_i32 = arith.constant 0 : i32
    %c0_i32_0 = arith.constant 0 : i32
    %c0_i32_1 = arith.constant 0 : i32
    return %c0_i32, %c0_i32_0 : i32, i32
  }
  func.func @transform_18(%arg0: i32) -> (i32, i32) {
    %c0_i32 = arith.constant 0 : i32
    %c0_i32_0 = arith.constant 0 : i32
    %c0_i32_1 = arith.constant 0 : i32
    return %c0_i32, %c0_i32_0 : i32, i32
  }
  func.func @transform_19(%arg0: i32) -> (i32, i32) {
    %c0_i32 = arith.constant 0 : i32
    %c0_i32_0 = arith.constant 0 : i32
    %c0_i32_1 = arith.constant 0 : i32
    return %c0_i32, %c0_i32_0 : i32, i32
  }
  func.func @transform_20(%arg0: i32) -> (i32, i32, i32) {
    %c0_i32 = arith.constant 0 : i32
    %c0_i32_0 = arith.constant 0 : i32
    %c0_i32_1 = arith.constant 0 : i32
    return %arg0, %c0_i32, %c0_i32_0 : i32, i32, i32
  }
}

</mosaic_0001>

<bundles_post_ra>
// kernel: ctc_transformer_decoder_forward.5
= control target key start
LH: loop header
LB: loop body
LE: loop exit
PB: predicated region body
PF: predicated region fallthrough
CT: control target
= control target key end

     0   :  { %v141_v0 = vmov 0.0   ;;  %vm142_vm0 = vmmov 0   ;;  %vm41_vm1 = vcmask 261120   ;;  %s184_s1 = inlined_call_operand.vmem [shape: bf16[32,128], index: 1, kind: input, shape index: {}]   ;;  %s185_s0 = inlined_call_operand.vmem [shape: f32[16,32], index: 0, kind: input, shape index: {}]   ;;  %s186_s2 = inlined_call_operand.vmem [shape: f32[1,128], index: 2, kind: input, shape index: {}]   ;;  %s187_s3 = inlined_call_operand.vmem [shape: f32[16,128], index: 3, kind: output, shape index: {}]  }
   0x1   :  { %121 = vmatprep.subr.bf16.mxu0 %v141_v0  ;;  %v131_v1 = vld [vmem:[%s184_s1] sm:$0xff]   ;;  %125 = vmatprep.mubr.msk.bf16.mxu0 %vm142_vm0, %v141_v0  ;;  %v132_v2 = vld [vmem:[%s184_s1 + $0x8] sm:$0xff]  }
   0x2   :  { %122 = vmatpush3.bf16.msra.mxu0 %v131_v1  ;;  %v15_v3 = vld [vmem:[%s185_s0] sm:$0xff]  ;;  %v16_v4 = vld [vmem:[%s185_s0 + $0x8] sm:$0xff] }
   0x3   :  { %123 = vmatprep.subr.bf16.mxu0 %v141_v0  ;;  %v17_v5 = vpack.c.bf16 %v16_v4, %v15_v3  ;;  %v114_v6 = vld [vmem:[%s186_s2] ss:$0 sm:$0xff] }
   0x6   :  { %124 = vmatpush3.bf16.msra.mxu0 %v132_v2 }
   0x9   :  { %126 = vmatmul.mubr.msk.bf16.vlgmr.msra.gmra.mrb[0].mxu0 %vm41_vm1, %v17_v5 }
  0xdc   :  { %v79_v7 = vpop.f32.mrb[0].mxu0 }
  0xdd   :  { %v80_v8 = vadd.f32 %v114_v6, %v79_v7  ;;  %v127_v9 = vpop.f32.mrb[1].mxu0 }
  0xde   :  { %v82_v10 = vpop.f32.mrb[2].mxu0 }
  0xdf   :  { %86 = vmax.xlane.f32.xlu0 %v80_v8  ;;  %v128_v11 = vpop.f32.mrb[3].mxu0  ;;  %v83_v12 = vadd.f32 %v114_v6, %v82_v10 }
  0xe3   :  { %88 = vmax.xlane.f32.xlu0 %v83_v12 }
 0x16c   :  { %v87_v13 = vpop.xlane.xlu0 %86 }
 0x16d   :  { %v90_v14 = vsub.f32 %v80_v8, %v87_v13 }
 0x16f   :  { %v92_v15 = vmul.f32 1.442695, %v90_v14 }
 0x170   :  { %v89_v16 = vpop.xlane.xlu0 %88 }
 0x171   :  { %v91_v17 = vsub.f32 %v83_v12, %v89_v16  ;;  %133 = vpow2.f32 %v92_v15 }
 0x173   :  { %v94_v18 = vmul.f32 1.442695, %v91_v17 }
 0x175   :  { %135 = vpow2.f32 %v94_v18 }
 0x17b   :  { %v134_v19 = vpop.eup %133 }
 0x17c   :  { %96 = vadd.xlane.f32.xlu1 %v134_v19 }
 0x17f   :  { %v136_v20 = vpop.eup %135 }
 0x180   :  { %98 = vadd.xlane.f32.xlu1 %v136_v20 }
 0x209   :  { %v97_v21 = vpop.xlane.xlu1 %96 }
 0x20a   :  { %137 = vlog2.f32 %v97_v21 }
 0x20d   :  { %v99_v22 = vpop.xlane.xlu1 %98 }
 0x20e   :  { %139 = vlog2.f32 %v99_v22 }
 0x214   :  { %v138_v23 = vpop.eup %137 }
 0x215   :  { %v101_v24 = vmul.f32 0.6931472, %v138_v23 }
 0x217   :  { %v104_v25 = vadd.f32 %v101_v24, %v87_v13 }
 0x218   :  { %v140_v26 = vpop.eup %139 }
 0x219   :  { %v106_v27 = vsub.f32 %v80_v8, %v104_v25  ;;  %v103_v28 = vmul.f32 0.6931472, %v140_v26 }
 0x21b   :  { %108 = vst [vmem:[%s187_s3] sm:$0xff] %v106_v27  ;;  %v105_v29 = vadd.f32 %v103_v28, %v89_v16 }
 0x21d   :  { %v107_v30 = vsub.f32 %v83_v12, %v105_v29 }
 0x21f   :  { %109 = vst [vmem:[%s187_s3 + $0x8] sm:$0xff] %v107_v30 }

// kernel: ctc_transformer_decoder_forward.3
= control target key start
LH: loop header
LB: loop body
LE: loop exit
PB: predicated region body
PF: predicated region fallthrough
CT: control target
= control target key end

     0   :  { %s3018_s0 = inlined_call_operand.vmem [shape: f32[2,8,32], index: 0, kind: input, shape index: {}]   ;;  %s3019_s1 = inlined_call_operand.vmem [shape: f32[2,8,32], index: 1, kind: input, shape index: {}]   ;;  %s3020_s2 = inlined_call_operand.vmem [shape: bf16[32,96], index: 2, kind: input, shape index: {}]   ;;  %s3021_s3 = inlined_call_operand.vmem [shape: f32[1,96], index: 3, kind: input, shape index: {}]   ;;  %s3022_s4 = inlined_call_operand.vmem [shape: bf16[32,32], index: 4, kind: input, shape index: {}]   ;;  %s3023_s5 = inlined_call_operand.vmem [shape: f32[1,32], index: 5, kind: input, shape index: {}]   ;;  %s3024_s6 = inlined_call_operand.vmem [shape: f32[1,32], index: 6, kind: input, shape index: {}]   ;;  %s3025_s7 = inlined_call_operand.vmem [shape: f32[1,32], index: 7, kind: input, shape index: {}]   ;;  %s3026_s8 = inlined_call_operand.vmem [shape: bf16[32,96], index: 8, kind: input, shape index: {}]   ;;  %s3027_s9 = inlined_call_operand.vmem [shape: f32[1,96], index: 9, kind: input, shape index: {}]   ;;  %s3028_s10 = inlined_call_operand.vmem [shape: bf16[32,32], index: 10, kind: input, shape index: {}]   ;;  %s3029_s11 = inlined_call_operand.vmem [shape: f32[1,32], index: 11, kind: input, shape index: {}]   ;;  %s3030_s12 = inlined_call_operand.vmem [shape: f32[1,32], index: 12, kind: input, shape index: {}]   ;;  %s3031_s13 = inlined_call_operand.vmem [shape: f32[1,32], index: 13, kind: input, shape index: {}]   ;;  %s3032_s14 = inlined_call_operand.vmem [shape: bf16[32,64], index: 14, kind: input, shape index: {}]   ;;  %s3033_s15 = inlined_call_operand.vmem [shape: f32[1,64], index: 15, kind: input, shape index: {}]   ;;  %s3034_s16 = inlined_call_operand.vmem [shape: bf16[64,32], index: 16, kind: input, shape index: {}]   ;;  %s3035_s17 = inlined_call_operand.vmem [shape: f32[1,32], index: 17, kind: input, shape index: {}]   ;;  %s3036_s18 = inlined_call_operand.vmem [shape: f32[1,32], index: 18, kind: input, shape index: {}]   ;;  %s3037_s19 = inlined_call_operand.vmem [shape: f32[1,32], index: 19, kind: input, shape index: {}]   ;;  %s3038_s20 = inlined_call_operand.vmem [shape: f32[2,8,32], index: 20, kind: output, shape index: {}]  }
   0x1   :  { %3043 = sst [smem:[#allocation2_spill]] %s3018_s0 }
   0x2   :  { %3044 = sst [smem:[#allocation3_spill]] %s3019_s1  ;;  %s2695_s1 = smov 0  }
   0x3   :  { %3045 = sst [smem:[#allocation4_spill]] %s3020_s2 }
   0x4   :  { %3046 = sst [smem:[#allocation5_spill]] %s3021_s3 }
   0x5   :  { %3047 = sst [smem:[#allocation6_spill]] %s3022_s4 }
   0x6 LB: > { %s2232_s22 = sadd.s32 4294967295, %s2578_s1   ;;  %p2236_p0 = scmp.ge.s32.totalorder %s2578_s1, 1  ;;  %s2578_s1 = sphi %s2695_s1, %s30_s1  }
   0x7   : > { %p570_p1 = scmp.lt.s32.totalorder %s2578_s1, 3 }
   0x9   : > { %p571_p2 = pnand %p2236_p0, %p570_p1 }
   0xa   : > { %s3048_s2 = sld [smem:[#allocation4_spill]] (!%p571_p2)  ;;  %v2580_v1 = vmov (!%p571_p2), 0.0   ;;  %vm2581_vm0 = vmmov (!%p571_p2), 0   ;;  %p630_p3 = scmp.lt.s32.totalorder (!%p571_p2), %s2232_s22, 1  ;;  %vm669_vm1 = vcmask (!%p571_p2), 261120   ;;  %vm750_vm2 = vcmask (!%p571_p2), 64512  }
   0xb   : > { %574 = sbr.rel (%p571_p2) target bundleno = 4355 (0x1103), region = 100  ;;  %2346 = vmatprep.subr.bf16.mxu1 (!%p571_p2), %v2580_v1  ;;  %2360 = vmatprep.subr.bf16.mxu0 (!%p571_p2), %v2580_v1  ;;  %s3049_s4 = sld [smem:[#allocation2_spill]] (!%p571_p2)  ;;  %vm997_vm3 = vcmask (!%p571_p2), 1043456   ;;  %vm1198_vm4 = vcmask (!%p571_p2), 130048   ;;  %vm1200_vm5 = vcmask (!%p571_p2), 195584   ;;  %vm2092_vm6 = vcmask (!%p571_p2), 523264  }
   0xc   : > { %2350 = vmatprep.mubr.msk.bf16.mxu1 (!%p571_p2), %vm2581_vm0, %v2580_v1  ;;  %2362 = vmatprep.mubr.msk.bf16.mxu0 (!%p571_p2), %vm2581_vm0, %v2580_v1  ;;  %s3050_s21 = sld [smem:[#allocation5_spill]] (!%p571_p2)  ;;  %s2583_s23 = smov (!%p571_p2), 120  }
   0xd   : > { %s2584_s24 = smov (!%p571_p2), 112   ;;  %s2585_s25 = smov (!%p571_p2), 96  }
   0xe   : > { %s2586_s3 = smov (!%p571_p2), 64   ;;  %s2587_s0 = smov (!%p571_p2), 8  }
   0xf   : > { %s3052_s27 = sld [smem:[#allocation3_spill]] (!%p571_p2)  ;;  %s3053_s30 = smov (!%p571_p2), 16  }
  0x10   : > { %v2520_v0 = vld [vmem:[%s3048_s2] sm:$0xff] (!%p571_p2)   ;;  %v2521_v2 = vld [vmem:[%s3048_s2 + $0x8] sm:$0xff] (!%p571_p2)  }
  0x11   : > { %2347 = vmatpush3.bf16.msra.mxu1 (!%p571_p2), %v2520_v0 }
  0x12   : > { %2348 = vmatprep.subr.bf16.mxu1 %v2580_v1  ;;  %s3056_s22 = smov (!%p630_p3, %s2232_s22), 1  ;;  %v2240_v5 = vld [vmem:[%s3050_s21] ss:$0 sm:$0xff]  ;;  %s3042_s21 = smov 16  }
  0x13   : > { %s2716_s26 = sshll.u32 %s3056_s22, 3  ;;  %s2582_s22 = smov 104  }
  0x14   : > { %s633_s29 = scalar_lea.vmem %s3049_s4, %s2716_s26  ;;  %s3051_s4 = sld [smem:[#allocation6_spill]] }
  0x15   : > { %2349 = vmatpush3.bf16.msra.mxu1 %v2521_v2  ;;  %v2723_v3 = vld [vmem:[%s633_s29] sm:$0xff] }
  0x16   : > { %2354 = vmatprep.subr.bf16.mxu1 %v2580_v1  ;;  %v645_v4 = vpack.c.bf16 %v2723_v3, %v2723_v3 }
  0x18   : > { %2351 = vmatmul.mubr.msk.bf16.vlgmr.msra.gmra.mrb[0].mxu1 %vm669_vm1, %v645_v4 }
  0x19   : > { %2356 = vmatprep.mubr.msk.bf16.mxu1 %vm2581_vm0, %v2580_v1 }
  0xeb   : > { %v707_v6 = vpop.f32.mrb[0].mxu1 }
  0xec   : > { %v708_v7 = vadd.f32 %v2240_v5, %v707_v6  ;;  %v2352_v8 = vpop.f32.mrb[1].mxu1 }
  0xed   : > { %v710_v9 = vpop.f32.mrb[2].mxu1 }
  0xee   : > { %740 = vrot.lane.b32.xlu1 %v708_v7, %s2582_s22  ;;  %734 = vrot.lane.b32.xlu0 %v708_v7, %s2583_s23  ;;  %v2353_v10 = vpop.f32.mrb[3].mxu1  ;;  %v2735_v11 = vpack.c.bf16 %v708_v7, %v708_v7  ;;  %v718_v12 = vmul.f32 0.35355338, %v708_v7 }
  0xf0   : > { %v729_v21 = vpack.c.bf16 %v718_v12, %v718_v12 }
  0xf2   : > { %737 = vrot.lane.b32.xlu0 %v708_v7, %s2584_s24  ;;  %748 = vrot.lane.b32.xlu1 %v2735_v11, %s2585_s25 }
  0xf6   : > { %720 = vrot.lane.b32.xlu1 %v718_v12, %s2583_s23 }
 0x160   : > { %v741_v13 = vpop.permute.xlu1 %740  ;;  %v735_v14 = vpop.permute.xlu0 %734 }
 0x161   : > { %v2741_v15 = vpack.c.bf16 %v741_v13, %v741_v13  ;;  %v2743_v16 = vpack.c.bf16 %v735_v14, %v735_v14 }
 0x163   : > { %798 = vrot.lane.b32.xlu0 %v2743_v16, %s2585_s25  ;;  %896 = vrot.lane.b32.xlu1 %v2741_v15, %s2585_s25 }
 0x164   : > { %v738_v17 = vpop.permute.xlu0 %737  ;;  %v749_v18 = vpop.permute.xlu1 %748 }
 0x165   : > { %v2749_v19 = vpack.c.bf16 %v738_v17, %v738_v17  ;;  %v755_v20 = vsel %vm750_vm2, %v749_v18, 0 }
 0x166   : > { %2355 = vmatpush3.bf16.xpose.msra.mxu1 %v755_v20 }
 0x167   : > { %847 = vrot.lane.b32.xlu0 %v2749_v19, %s2585_s25  ;;  %726 = vrot.lane.b32.xlu1 %v718_v12, %s2582_s22 }
 0x168   : > { %2366 = vmatprep.subr.bf16.mxu1 %v2580_v1  ;;  %v721_v24 = vpop.permute.xlu1 %720 }
 0x169   : > { %v730_v28 = vpack.c.bf16 %v721_v24, %v721_v24 }
 0x16b   : > { %723 = vrot.lane.b32.xlu0 %v718_v12, %s2584_s24 }
 0x16d   : > { %2357 = vmatmul.mubr.msk.bf16.vlgmr.msra.gmra.mrb[4].mxu1 %vm750_vm2, %v729_v21 }
 0x16e   : > { %2368 = vmatprep.mubr.msk.bf16.mxu1 %vm2581_vm0, %v2580_v1 }
 0x1d5   : > { %v799_v22 = vpop.permute.xlu0 %798  ;;  %v897_v27 = vpop.permute.xlu1 %896 }
 0x1d6   : > { %v804_v23 = vsel %vm750_vm2, %v799_v22, 0  ;;  %v902_v30 = vsel %vm750_vm2, %v897_v27, 0 }
 0x1d7   : > { %2361 = vmatpush3.bf16.xpose.msra.mxu0 %v804_v23 }
 0x1d8   : > { %2372 = vmatprep.subr.bf16.mxu0 %v2580_v1 }
 0x1d9   : > { %v848_v25 = vpop.permute.xlu0 %847  ;;  %v727_v32 = vpop.permute.xlu1 %726 }
 0x1da   : > { %v853_v26 = vsel %vm750_vm2, %v848_v25, 0  ;;  %v732_v33 = vpack.c.bf16 %v727_v32, %v727_v32 }
 0x1db   : > { %2367 = vmatpush3.bf16.xpose.msra.mxu1 %v853_v26 }
 0x1dc   : > { %2378 = vmatprep.subr.bf16.mxu1 %v2580_v1 }
 0x1dd   : > { %v724_v29 = vpop.permute.xlu0 %723 }
 0x1de   : > { %2363 = vmatmul.mubr.msk.bf16.vlgmr.msra.gmra.mrb[0].mxu0 %vm750_vm2, %v730_v28  ;;  %v731_v31 = vpack.c.bf16 %v724_v29, %v724_v29 }
 0x1df   : > { %2373 = vmatpush3.bf16.xpose.msra.mxu0 %v902_v30  ;;  %2374 = vmatprep.mubr.msk.bf16.mxu0 %vm2581_vm0, %v2580_v1 }
 0x1e0   : > { %2384 = vmatprep.subr.bf16.mxu0 %v2580_v1 }
 0x1e2   : > { %2369 = vmatmul.mubr.msk.bf16.vlgmr.msra.gmra.mrb[8].mxu1 %vm750_vm2, %v731_v31 }
 0x1e3   : > { %2380 = vmatprep.mubr.msk.bf16.mxu1 %vm2581_vm0, %v2580_v1 }
 0x1e6   : > { %2375 = vmatmul.mubr.msk.bf16.vlgmr.msra.gmra.mrb[4].mxu0 %vm750_vm2, %v732_v33 }
 0x1e7   : > { %2386 = vmatprep.mubr.msk.bf16.mxu0 %vm2581_vm0, %v2580_v1 }
 0x240   : > { %v791_v34 = vpop.f32.mrb[4].mxu1 }
 0x241   : > { %v2358_v35 = vpop.f32.mrb[5].mxu1  ;;  %v944_v36 = vsel %vm750_vm2, %v791_v34, -inf }
 0x242   : > { %945 = vmax.xlane.f32.xlu0 %v944_v36  ;;  %v794_v37 = vpop.f32.mrb[6].mxu1 }
 0x243   : > { %v2359_v38 = vpop.f32.mrb[7].mxu1 }
 0x2b1   : > { %v840_v39 = vpop.f32.mrb[0].mxu0 }
 0x2b2   : > { %v2364_v40 = vpop.f32.mrb[1].mxu0  ;;  %v947_v41 = vsel %vm750_vm2, %v840_v39, -inf }
 0x2b3   : > { %948 = vmax.xlane.f32.xlu1 %v947_v41  ;;  %v843_v42 = vpop.f32.mrb[2].mxu0  ;;  %v2522_v40 = vld [vmem:[%s3051_s4] sm:$0xff]   ;;  %v2523_v41 = vld [vmem:[%s3051_s4 + $0x8] sm:$0xff]  }
 0x2b4   : > { %v2365_v43 = vpop.f32.mrb[3].mxu0 }
 0x2b5   : > { %v889_v44 = vpop.f32.mrb[8].mxu1 }
 0x2b6   : > { %v2370_v45 = vpop.f32.mrb[9].mxu1  ;;  %v950_v46 = vsel %vm750_vm2, %v889_v44, -inf }
 0x2b7   : > { %951 = vmax.xlane.f32.xlu0 %v950_v46  ;;  %v892_v47 = vpop.f32.mrb[10].mxu1 }
 0x2b8   : > { %v2371_v48 = vpop.f32.mrb[11].mxu1 }
 0x2b9   : > { %v938_v49 = vpop.f32.mrb[4].mxu0 }
 0x2ba   : > { %v2376_v50 = vpop.f32.mrb[5].mxu0  ;;  %v953_v51 = vsel %vm750_vm2, %v938_v49, -inf }
 0x2bb   : > { %v941_v52 = vpop.f32.mrb[6].mxu0  ;;  %954 = vmax.xlane.f32.xlu0 %v953_v51 }
 0x2bc   : > { %v2377_v53 = vpop.f32.mrb[7].mxu0 }
 0x2c4   : > { %992 = vrot.lane.b32.xlu1 %v2735_v11, %s2586_s3 }
 0x2cf   : > { %v946_v54 = vpop.xlane.xlu0 %945 }
 0x2d0   : > { %v956_v55 = vsub.f32 %v791_v34, %v946_v54 }
 0x2d2   : > { %v960_v56 = vmul.f32 1.442695, %v956_v55 }
 0x2d4   : > { %2534 = vpow2.f32 %v960_v56 }
 0x2de   : > { %v2535_v57 = vpop.eup %2534 }
 0x2df   : > { %v968_v58 = vsel %vm750_vm2, %v2535_v57, 0.0 }
 0x2e8   : > { %969 = vadd.xlane.f32.xlu1 %v968_v58 }
 0x340   : > { %v949_v59 = vpop.xlane.xlu1 %948 }
 0x341   : > { %v957_v60 = vsub.f32 %v840_v39, %v949_v59 }
 0x343   : > { %v962_v61 = vmul.f32 1.442695, %v957_v60 }
 0x344   : > { %v993_v62 = vpop.permute.xlu1 %992  ;;  %v952_v63 = vpop.xlane.xlu0 %951 }
 0x345   : > { %2536 = vpow2.f32 %v962_v61  ;;  %v999_v0 = vsel %vm997_vm3, %v993_v62, 0  ;;  %v958_v2 = vsub.f32 %v889_v44, %v952_v63  ;;  %v2252_v61 = vld [vmem:[%s3023_s5] ss:$0 sm:$0xff] }
 0x346   : > { %2379 = vmatpush3.bf16.msra.mxu1 %v999_v0 }
 0x347   : > { %v964_v4 = vmul.f32 1.442695, %v958_v2  ;;  %2390 = vmatprep.subr.bf16.mxu1 %v2580_v1 }
 0x348   : > { %v955_v5 = vpop.xlane.xlu0 %954 }
 0x349   : > { %2538 = vpow2.f32 %v964_v4  ;;  %v959_v6 = vsub.f32 %v938_v49, %v955_v5 }
 0x34b   : > { %v966_v7 = vmul.f32 1.442695, %v959_v6 }
 0x34d   : > { %2540 = vpow2.f32 %v966_v7  ;;  %v2524_v7 = vld [vmem:[%s3026_s8] sm:$0xff]  }
 0x34f   : > { %v2537_v8 = vpop.eup %2536 }
 0x350   : > { %v971_v9 = vsel %vm750_vm2, %v2537_v8, 0.0 }
 0x351   : > { %972 = vadd.xlane.f32.xlu0 %v971_v9 }
 0x353   : > { %v2539_v10 = vpop.eup %2538 }
 0x354   : > { %v974_v11 = vsel %vm750_vm2, %v2539_v10, 0.0 }
 0x355   : > { %975 = vadd.xlane.f32.xlu1 %v974_v11 }
 0x357   : > { %v2541_v12 = vpop.eup %2540 }
 0x358   : > { %v977_v13 = vsel %vm750_vm2, %v2541_v12, 0.0 }
 0x359   : > { %978 = vadd.xlane.f32.xlu0 %v977_v13  ;;  %v2258_v13 = vld [vmem:[%s3027_s9] ss:$0 sm:$0xff] }
 0x366   : > { %1089 = vrot.lane.b32.xlu1 %v2749_v19, %s2586_s3 }
 0x36a   : > { %1137 = vrot.lane.b32.xlu1 %v2741_v15, %s2586_s3 }
 0x36f   : > { %1041 = vrot.lane.b32.xlu0 %v2743_v16, %s2586_s3  ;;  %s3041_s3 = smov 24  }
 0x375   : > { %v970_v14 = vpop.xlane.xlu1 %969 }
 0x376   : > { %2542 = vrcp.f32 %v970_v14 }
 0x380   : > { %v2543_v17 = vpop.eup %2542 }
 0x381   : > { %v984_v18 = vmul.f32 %v2543_v17, %v2535_v57 }
 0x383   : > { %v988_v20 = vpack.c.bf16 %v984_v18, %v984_v18 }
 0x385   : > { %2381 = vmatmul.mubr.msk.bf16.vlgmr.msra.gmra.mrb[12].mxu1 %vm750_vm2, %v988_v20 }
 0x386   : > { %2392 = vmatprep.mubr.msk.bf16.mxu1 %vm2581_vm0, %v2580_v1 }
 0x3de   : > { %v973_v21 = vpop.xlane.xlu0 %972 }
 0x3df   : > { %2544 = vrcp.f32 %v973_v21 }
 0x3e2   : > { %v976_v22 = vpop.xlane.xlu1 %975 }
 0x3e3   : > { %2546 = vrcp.f32 %v976_v22 }
 0x3e6   : > { %v1090_v19 = vpop.permute.xlu1 %1089  ;;  %v979_v23 = vpop.xlane.xlu0 %978 }
 0x3e7   : > { %v1095_v15 = vsel %vm997_vm3, %v1090_v19, 0  ;;  %2548 = vrcp.f32 %v979_v23 }
 0x3e8   : > { %2391 = vmatpush3.bf16.msra.mxu1 %v1095_v15  ;;  %v2256_v15 = vld [vmem:[%s3024_s6] ss:$0 sm:$0xff] }
 0x3e9   : > { %v2545_v16 = vpop.eup %2544  ;;  %2402 = vmatprep.subr.bf16.mxu1 %v2580_v1 }
 0x3ea   : > { %v985_v24 = vmul.f32 %v2545_v16, %v2537_v8  ;;  %v1042_v25 = vpop.permute.xlu0 %1041  ;;  %v1138_v27 = vpop.permute.xlu1 %1137  ;;  %v2525_v8 = vld [vmem:[%s3026_s8 + $0x8] sm:$0xff]  }
 0x3eb   : > { %v1047_v26 = vsel %vm997_vm3, %v1042_v25, 0  ;;  %v1143_v31 = vsel %vm997_vm3, %v1138_v27, 0 }
 0x3ec   : > { %2385 = vmatpush3.bf16.msra.mxu0 %v1047_v26  ;;  %v989_v28 = vpack.c.bf16 %v985_v24, %v985_v24  ;;  %v2257_v24 = vld [vmem:[%s3025_s7] ss:$0 sm:$0xff] }
 0x3ed   : > { %v2547_v29 = vpop.eup %2546  ;;  %2396 = vmatprep.subr.bf16.mxu0 %v2580_v1 }
 0x3ee   : > { %v986_v30 = vmul.f32 %v2547_v29, %v2539_v10 }
 0x3ef   : > { %2387 = vmatmul.mubr.msk.bf16.vlgmr.msra.gmra.mrb[8].mxu0 %vm750_vm2, %v989_v28 }
 0x3f0   : > { %2397 = vmatpush3.bf16.msra.mxu0 %v1143_v31  ;;  %v990_v32 = vpack.c.bf16 %v986_v30, %v986_v30  ;;  %2398 = vmatprep.mubr.msk.bf16.mxu0 %vm2581_vm0, %v2580_v1 }
 0x3f1   : > { %v2549_v33 = vpop.eup %2548  ;;  %2410 = vmatprep.subr.bf16.mxu0 %v2580_v1 }
 0x3f2   : > { %v987_v34 = vmul.f32 %v2549_v33, %v2541_v12  ;;  %2393 = vmatmul.mubr.msk.bf16.vlgmr.msra.gmra.mrb[16].mxu1 %vm750_vm2, %v990_v32 }
 0x3f3   : > { %2406 = vmatprep.mubr.msk.bf16.mxu1 %vm2581_vm0, %v2580_v1  ;;  %2403 = vmatpush3.bf16.msra.mxu1 %v2522_v40 }
 0x3f4   : > { %v991_v35 = vpack.c.bf16 %v987_v34, %v987_v34  ;;  %2404 = vmatprep.subr.bf16.mxu1 %v2580_v1 }
 0x3f7   : > { %2399 = vmatmul.mubr.msk.bf16.vlgmr.msra.gmra.mrb[12].mxu0 %vm750_vm2, %v991_v35  ;;  %2405 = vmatpush3.bf16.msra.mxu1 %v2523_v41 }
 0x3f8   : > { %2414 = vmatprep.mubr.msk.bf16.mxu0 %vm2581_vm0, %v2580_v1  ;;  %2418 = vmatprep.subr.bf16.mxu1 %v2580_v1 }
 0x3f9   : > { %2411 = vmatpush3.bf16.msra.mxu0 %v2524_v7 }
 0x3fa   : > { %2412 = vmatprep.subr.bf16.mxu0 %v2580_v1 }
 0x3fd   : > { %2413 = vmatpush3.bf16.msra.mxu0 %v2525_v8 }
 0x3fe   : > { %2426 = vmatprep.subr.bf16.mxu0 %v2580_v1 }
 0x458   : > { %v1035_v36 = vpop.f32.mrb[12].mxu1 }
 0x459   : > { %v2382_v37 = vpop.f32.mrb[13].mxu1 }
 0x45a   : > { %v1038_v38 = vpop.f32.mrb[14].mxu1 }
 0x45b   : > { %v2383_v39 = vpop.f32.mrb[15].mxu1 }
 0x4c2   : > { %v1083_v42 = vpop.f32.mrb[8].mxu0 }
 0x4c3   : > { %1186 = vrot.lane.b32.xlu0 %v1083_v42, %s2587_s0  ;;  %v2388_v43 = vpop.f32.mrb[9].mxu0 }
 0x4c4   : > { %v1086_v44 = vpop.f32.mrb[10].mxu0 }
 0x4c5   : > { %v2389_v45 = vpop.f32.mrb[11].mxu0  ;;  %v1131_v46 = vpop.f32.mrb[16].mxu1 }
 0x4c6   : > { %1190 = vrot.lane.b32.xlu1 %v1131_v46, %s3042_s21  ;;  %v2394_v47 = vpop.f32.mrb[17].mxu1  ;;  %s637_s21 = scalar_lea.vmem %s3052_s27, %s2716_s26  ;;  %s3054_s27 = smov 24  }
 0x4c7   : > { %v1134_v48 = vpop.f32.mrb[18].mxu1  ;;  %v644_v21 = vld [vmem:[%s637_s21] sm:$0xff] }
 0x4c8   : > { %v2395_v49 = vpop.f32.mrb[19].mxu1  ;;  %v1362_v19 = vpack.c.bf16 %v644_v21, %v644_v21 }
 0x4ca   : > { %v1179_v50 = vpop.f32.mrb[12].mxu0 }
 0x4cb   : > { %1194 = vrot.lane.b32.xlu0 %v1179_v50, %s3041_s3  ;;  %v2400_v51 = vpop.f32.mrb[13].mxu0 }
 0x4cc   : > { %v1182_v52 = vpop.f32.mrb[14].mxu0 }
 0x4cd   : > { %v2401_v53 = vpop.f32.mrb[15].mxu0 }
 0x535   : > { %v1187_v54 = vpop.permute.xlu0 %1186 }
 0x536   : > { %v1197_v56 = vsel %vm750_vm2, %v1035_v36, %v1187_v54 }
 0x538   : > { %v1191_v55 = vpop.permute.xlu1 %1190 }
 0x539   : > { %v1199_v57 = vsel %vm1198_vm4, %v1197_v56, %v1191_v55 }
 0x53d   : > { %v1195_v58 = vpop.permute.xlu0 %1194 }
 0x53e   : > { %v1201_v59 = vsel %vm1200_vm5, %v1199_v57, %v1195_v58 }
 0x53f   : > { %v1202_v60 = vpack.c.bf16 %v1201_v59, %v1201_v59 }
 0x541   : > { %2407 = vmatmul.mubr.msk.bf16.vlgmr.msra.gmra.mrb[20].mxu1 %vm669_vm1, %v1202_v60 }
 0x542   : > { %2422 = vmatprep.mubr.msk.bf16.mxu1 %vm2581_vm0, %v2580_v1 }
 0x614   : > { %v1258_v62 = vpop.f32.mrb[20].mxu1 }
 0x615   : > { %v1259_v63 = vadd.f32 %v2252_v61, %v1258_v62  ;;  %v2408_v0 = vpop.f32.mrb[21].mxu1 }
 0x616   : > { %v1261_v2 = vpop.f32.mrb[22].mxu1 }
 0x617   : > { %v2409_v4 = vpop.f32.mrb[23].mxu1  ;;  %v1264_v5 = vadd.f32 %v1259_v63, %v2723_v3 }
 0x619   : > { %v1267_v6 = vsel %vm669_vm1, %v1264_v5, 0.0 }
 0x61a   : > { %1268 = vadd.xlane.f32.xlu1 %v1267_v6 }
 0x62b   : > { %1365 = vrot.lane.b32.xlu1 %v2525_v8, %s2585_s25 }
 0x62f   : > { %1369 = vrot.lane.b32.xlu1 %v2258_v13, %s2585_s25 }
 0x6a7   : > { %v1269_v3 = vpop.xlane.xlu1 %1268 }
 0x6a8   : > { %v1271_v9 = vmul.f32 0.03125, %v1269_v3 }
 0x6aa   : > { %v1272_v10 = vsub.f32 %v1264_v5, %v1271_v9 }
 0x6ab   : > { %v1366_v22 = vpop.permute.xlu1 %1365 }
 0x6ac   : > { %v1273_v11 = vmul.f32 %v1272_v10, %v1272_v10 }
 0x6ae   : > { %v1274_v12 = vsel %vm669_vm1, %v1273_v11, 0.0 }
 0x6af   : > { %1275 = vadd.xlane.f32.xlu0 %v1274_v12  ;;  %v1370_v28 = vpop.permute.xlu1 %1369 }
 0x6c5   : > { %1363 = vrot.lane.b32.xlu0 %v2524_v7, %s2585_s25 }
 0x73c   : > { %v1276_v14 = vpop.xlane.xlu0 %1275 }
 0x73d   : > { %v1277_v17 = vmul.f32 0.03125, %v1276_v14 }
 0x73f   : > { %v1278_v18 = vadd.f32 1e-05, %v1277_v17 }
 0x740   : > { %v1364_v20 = vpop.permute.xlu0 %1363 }
 0x741   : > { %2550 = vrsqrt.f32 %v1278_v18  ;;  %2419 = vmatpush3.bf16.msra.mxu1 %v1364_v20 }
 0x742   : > { %2420 = vmatprep.subr.bf16.mxu1 %v2580_v1 }
 0x745   : > { %2421 = vmatpush3.bf16.msra.mxu1 %v1366_v22 }
 0x746   : > { %2432 = vmatprep.subr.bf16.mxu1 %v2580_v1 }
 0x748   : > { %2423 = vmatmul.mubr.msk.bf16.vlgmr.msra.gmra.mrb[24].mxu1 %vm669_vm1, %v1362_v19 }
 0x749   : > { %2434 = vmatprep.mubr.msk.bf16.mxu1 %vm2581_vm0, %v2580_v1 }
 0x74b   : > { %v2551_v23 = vpop.eup %2550 }
 0x74c   : > { %v1280_v16 = vmul.f32 %v2551_v23, %v1272_v10 }
 0x74e   : > { %v1287_v25 = vmul.f32 %v2256_v15, %v1280_v16 }
 0x750   : > { %v2863_v26 = vadd.f32 %v2257_v24, %v1287_v25 }
 0x752   : > { %v1300_v27 = vpack.c.bf16 %v2863_v26, %v2863_v26 }
 0x754   : > { %2415 = vmatmul.mubr.msk.bf16.vlgmr.msra.gmra.mrb[16].mxu0 %vm669_vm1, %v1300_v27 }
 0x755   : > { %2428 = vmatprep.mubr.msk.bf16.mxu0 %vm2581_vm0, %v2580_v1 }
 0x81b   : > { %v1409_v29 = vpop.f32.mrb[24].mxu1 }
 0x81c   : > { %v1410_v30 = vadd.f32 %v1409_v29, %v1370_v28  ;;  %v2424_v31 = vpop.f32.mrb[25].mxu1 }
 0x81d   : > { %v1412_v32 = vpop.f32.mrb[26].mxu1 }
 0x81e   : > { %1439 = vrot.lane.b32.xlu1 %v1410_v30, %s2584_s24  ;;  %v2425_v33 = vpop.f32.mrb[27].mxu1  ;;  %1436 = vrot.lane.b32.xlu0 %v1410_v30, %s2583_s23  ;;  %v2872_v34 = vpack.c.bf16 %v1410_v30, %v1410_v30 }
 0x820   : > { %v1453_v35 = vsel %vm750_vm2, %v2872_v34, 0 }
 0x821   : > { %2427 = vmatpush3.bf16.xpose.msra.mxu0 %v1453_v35 }
 0x822   : > { %1442 = vrot.lane.b32.xlu1 %v1410_v30, %s2582_s22  ;;  %2438 = vmatprep.subr.bf16.mxu0 %v2580_v1 }
 0x827   : > { %v1356_v36 = vpop.f32.mrb[16].mxu0 }
 0x828   : > { %v1357_v37 = vadd.f32 %v2258_v13, %v1356_v36  ;;  %v2416_v38 = vpop.f32.mrb[17].mxu0 }
 0x829   : > { %v1359_v39 = vpop.f32.mrb[18].mxu0 }
 0x82a   : > { %v1420_v40 = vmul.f32 0.35355338, %v1357_v37  ;;  %v2417_v41 = vpop.f32.mrb[19].mxu0 }
 0x82c   : > { %v1431_v42 = vpack.c.bf16 %v1420_v40, %v1420_v40  ;;  %1428 = vrot.lane.b32.xlu1 %v1420_v40, %s2582_s22  ;;  %1422 = vrot.lane.b32.xlu0 %v1420_v40, %s2583_s23  ;;  %s641_s23 = scalar_lea.vmem %s3038_s20, %s2716_s26 }
 0x82e   : > { %2429 = vmatmul.mubr.msk.bf16.vlgmr.msra.gmra.mrb[20].mxu0 %vm750_vm2, %v1431_v42 }
 0x82f   : > { %2440 = vmatprep.mubr.msk.bf16.mxu0 %vm2581_vm0, %v2580_v1 }
 0x830   : > { %1425 = vrot.lane.b32.xlu0 %v1420_v40, %s2584_s24 }
 0x890   : > { %v1440_v43 = vpop.permute.xlu1 %1439  ;;  %v1437_v44 = vpop.permute.xlu0 %1436 }
 0x891   : > { %v2884_v45 = vpack.c.bf16 %v1440_v43, %v1440_v43  ;;  %v2886_v46 = vpack.c.bf16 %v1437_v44, %v1437_v44 }
 0x893   : > { %v1545_v47 = vsel %vm750_vm2, %v2884_v45, 0  ;;  %v1499_v48 = vsel %vm750_vm2, %v2886_v46, 0 }
 0x894   : > { %2433 = vmatpush3.bf16.xpose.msra.mxu1 %v1499_v48  ;;  %2439 = vmatpush3.bf16.xpose.msra.mxu0 %v1545_v47  ;;  %v1443_v49 = vpop.permute.xlu1 %1442 }
 0x895   : > { %2444 = vmatprep.subr.bf16.mxu1 %v2580_v1  ;;  %2450 = vmatprep.subr.bf16.mxu0 %v2580_v1  ;;  %v2894_v50 = vpack.c.bf16 %v1443_v49, %v1443_v49 }
 0x897   : > { %v1591_v53 = vsel %vm750_vm2, %v2894_v50, 0 }
 0x89e   : > { %v1423_v51 = vpop.permute.xlu0 %1422  ;;  %v1429_v56 = vpop.permute.xlu1 %1428 }
 0x89f   : > { %v1432_v52 = vpack.c.bf16 %v1423_v51, %v1423_v51  ;;  %v1434_v57 = vpack.c.bf16 %v1429_v56, %v1429_v56 }
 0x8a1   : > { %2435 = vmatmul.mubr.msk.bf16.vlgmr.msra.gmra.mrb[28].mxu1 %vm750_vm2, %v1432_v52 }
 0x8a2   : > { %2445 = vmatpush3.bf16.xpose.msra.mxu1 %v1591_v53  ;;  %v1426_v54 = vpop.permute.xlu0 %1425  ;;  %2446 = vmatprep.mubr.msk.bf16.mxu1 %vm2581_vm0, %v2580_v1 }
 0x8a3   : > { %v1433_v55 = vpack.c.bf16 %v1426_v54, %v1426_v54  ;;  %2456 = vmatprep.subr.bf16.mxu1 %v2580_v1 }
 0x8a5   : > { %2441 = vmatmul.mubr.msk.bf16.vlgmr.msra.gmra.mrb[24].mxu0 %vm750_vm2, %v1433_v55 }
 0x8a6   : > { %2452 = vmatprep.mubr.msk.bf16.mxu0 %vm2581_vm0, %v2580_v1 }
 0x8a9   : > { %2447 = vmatmul.mubr.msk.bf16.vlgmr.msra.gmra.mrb[32].mxu1 %vm750_vm2, %v1434_v57 }
 0x8aa   : > { %2458 = vmatprep.mubr.msk.bf16.mxu1 %vm2581_vm0, %v2580_v1 }
 0x901   : > { %v1489_v58 = vpop.f32.mrb[20].mxu0 }
 0x902   : > { %v2430_v59 = vpop.f32.mrb[21].mxu0  ;;  %v1633_v60 = vsel %vm750_vm2, %v1489_v58, -inf }
 0x903   : > { %1634 = vmax.xlane.f32.xlu0 %v1633_v60  ;;  %v1492_v61 = vpop.f32.mrb[22].mxu0 }
 0x904   : > { %v2431_v62 = vpop.f32.mrb[23].mxu0 }
 0x974   : > { %v1535_v63 = vpop.f32.mrb[28].mxu1 }
 0x975   : > { %v2436_v0 = vpop.f32.mrb[29].mxu1  ;;  %v1636_v2 = vsel %vm750_vm2, %v1535_v63, -inf }
 0x976   : > { %1637 = vmax.xlane.f32.xlu1 %v1636_v2  ;;  %v1538_v4 = vpop.f32.mrb[30].mxu1  ;;  %v2526_v0 = vld [vmem:[%s3028_s10] sm:$0xff]   ;;  %v2527_v2 = vld [vmem:[%s3028_s10 + $0x8] sm:$0xff]  }
 0x977   : > { %v2437_v5 = vpop.f32.mrb[31].mxu1 }
 0x978   : > { %v1581_v6 = vpop.f32.mrb[24].mxu0 }
 0x979   : > { %v2442_v7 = vpop.f32.mrb[25].mxu0  ;;  %v1639_v8 = vsel %vm750_vm2, %v1581_v6, -inf }
 0x97a   : > { %1640 = vmax.xlane.f32.xlu0 %v1639_v8  ;;  %v1584_v3 = vpop.f32.mrb[26].mxu0 }
 0x97b   : > { %v2443_v9 = vpop.f32.mrb[27].mxu0 }
 0x97c   : > { %v1627_v10 = vpop.f32.mrb[32].mxu1 }
 0x97d   : > { %v2448_v11 = vpop.f32.mrb[33].mxu1  ;;  %v1642_v12 = vsel %vm750_vm2, %v1627_v10, -inf }
 0x97e   : > { %1643 = vmax.xlane.f32.xlu0 %v1642_v12  ;;  %v1630_v13 = vpop.f32.mrb[34].mxu1 }
 0x97f   : > { %v2449_v14 = vpop.f32.mrb[35].mxu1 }
 0x987   : > { %1682 = vrot.lane.b32.xlu1 %v2872_v34, %s2585_s25 }
 0x990   : > { %v1635_v17 = vpop.xlane.xlu0 %1634 }
 0x991   : > { %v1645_v18 = vsub.f32 %v1489_v58, %v1635_v17 }
 0x993   : > { %v1649_v20 = vmul.f32 1.442695, %v1645_v18 }
 0x995   : > { %2552 = vpow2.f32 %v1649_v20 }
 0x99f   : > { %v2553_v21 = vpop.eup %2552 }
 0x9a0   : > { %v1657_v22 = vsel %vm750_vm2, %v2553_v21, 0.0 }
 0x9ab   : > { %1658 = vadd.xlane.f32.xlu1 %v1657_v22 }
 0xa03   : > { %v1638_v19 = vpop.xlane.xlu1 %1637 }
 0xa04   : > { %v1646_v23 = vsub.f32 %v1535_v63, %v1638_v19 }
 0xa06   : > { %v1651_v15 = vmul.f32 1.442695, %v1646_v23 }
 0xa07   : > { %v1641_v16 = vpop.xlane.xlu0 %1640  ;;  %v1683_v24 = vpop.permute.xlu1 %1682 }
 0xa08   : > { %2554 = vpow2.f32 %v1651_v15  ;;  %v1647_v25 = vsub.f32 %v1581_v6, %v1641_v16  ;;  %v1688_v27 = vsel %vm997_vm3, %v1683_v24, 0  ;;  %v2271_v15 = vld [vmem:[%s3029_s11] ss:$0 sm:$0xff] }
 0xa09   : > { %2451 = vmatpush3.bf16.msra.mxu0 %v1688_v27 }
 0xa0a   : > { %v1653_v28 = vmul.f32 1.442695, %v1647_v25  ;;  %2462 = vmatprep.subr.bf16.mxu0 %v2580_v1 }
 0xa0b   : > { %v1644_v29 = vpop.xlane.xlu0 %1643 }
 0xa0c   : > { %2556 = vpow2.f32 %v1653_v28  ;;  %v1648_v30 = vsub.f32 %v1627_v10, %v1644_v29 }
 0xa0e   : > { %v1655_v31 = vmul.f32 1.442695, %v1648_v30 }
 0xa10   : > { %2558 = vpow2.f32 %v1655_v31 }
 0xa12   : > { %v2555_v32 = vpop.eup %2554 }
 0xa13   : > { %v1660_v33 = vsel %vm750_vm2, %v2555_v32, 0.0 }
 0xa14   : > { %1661 = vadd.xlane.f32.xlu0 %v1660_v33 }
 0xa16   : > { %v2557_v34 = vpop.eup %2556 }
 0xa17   : > { %v1663_v35 = vsel %vm750_vm2, %v2557_v34, 0.0 }
 0xa18   : > { %1664 = vadd.xlane.f32.xlu1 %v1663_v35 }
 0xa1a   : > { %v2559_v36 = vpop.eup %2558 }
 0xa1b   : > { %v1666_v37 = vsel %vm750_vm2, %v2559_v36, 0.0 }
 0xa1c   : > { %1667 = vadd.xlane.f32.xlu0 %v1666_v37  ;;  %v2529_v37 = vld [vmem:[%s3032_s14 + $0x8] sm:$0xff]  }
 0xa29   : > { %1780 = vrot.lane.b32.xlu1 %v2884_v45, %s2585_s25 }
 0xa2d   : > { %1829 = vrot.lane.b32.xlu1 %v2894_v50, %s2585_s25 }
 0xa32   : > { %1731 = vrot.lane.b32.xlu0 %v2886_v46, %s2585_s25 }
 0xa38   : > { %v1659_v38 = vpop.xlane.xlu1 %1658 }
 0xa39   : > { %2560 = vrcp.f32 %v1659_v38  ;;  %v2531_v38 = vld [vmem:[%s3034_s16 + $0x8] sm:$0xff]  }
 0xa43   : > { %v2561_v39 = vpop.eup %2560 }
 0xa44   : > { %v1673_v40 = vmul.f32 %v2561_v39, %v2553_v21 }
 0xa46   : > { %v1677_v41 = vpack.c.bf16 %v1673_v40, %v1673_v40 }
 0xa48   : > { %2453 = vmatmul.mubr.msk.bf16.vlgmr.msra.gmra.mrb[28].mxu0 %vm750_vm2, %v1677_v41 }
 0xa49   : > { %2464 = vmatprep.mubr.msk.bf16.mxu0 %vm2581_vm0, %v2580_v1 }
 0xaa1   : > { %v1662_v42 = vpop.xlane.xlu0 %1661 }
 0xaa2   : > { %2562 = vrcp.f32 %v1662_v42 }
 0xaa5   : > { %v1665_v43 = vpop.xlane.xlu1 %1664 }
 0xaa6   : > { %2564 = vrcp.f32 %v1665_v43  ;;  %v2275_v43 = vld [vmem:[%s3030_s12] ss:$0 sm:$0xff] }
 0xaa9   : > { %v1781_v44 = vpop.permute.xlu1 %1780  ;;  %v1668_v45 = vpop.xlane.xlu0 %1667 }
 0xaaa   : > { %v1786_v47 = vsel %vm997_vm3, %v1781_v44, 0  ;;  %2566 = vrcp.f32 %v1668_v45  ;;  %v2276_v45 = vld [vmem:[%s3031_s13] ss:$0 sm:$0xff] }
 0xaab   : > { %2463 = vmatpush3.bf16.msra.mxu0 %v1786_v47 }
 0xaac   : > { %v2563_v46 = vpop.eup %2562  ;;  %2474 = vmatprep.subr.bf16.mxu0 %v2580_v1 }
 0xaad   : > { %v1674_v48 = vmul.f32 %v2563_v46, %v2555_v32  ;;  %v1732_v49 = vpop.permute.xlu0 %1731  ;;  %v1830_v51 = vpop.permute.xlu1 %1829 }
 0xaae   : > { %v1737_v50 = vsel %vm997_vm3, %v1732_v49, 0  ;;  %v1835_v55 = vsel %vm997_vm3, %v1830_v51, 0  ;;  %v2532_v49 = vld [vmem:[%s3034_s16 + $0x10] sm:$0xff]   ;;  %v2277_v51 = vld [vmem:[%s3033_s15] ss:$0 sm:$0xff] }
 0xaaf   : > { %2457 = vmatpush3.bf16.msra.mxu1 %v1737_v50  ;;  %v1678_v52 = vpack.c.bf16 %v1674_v48, %v1674_v48  ;;  %v2533_v50 = vld [vmem:[%s3034_s16 + $0x18] sm:$0xff]  }
 0xab0   : > { %v2565_v53 = vpop.eup %2564  ;;  %2468 = vmatprep.subr.bf16.mxu1 %v2580_v1 }
 0xab1   : > { %v1675_v54 = vmul.f32 %v2565_v53, %v2557_v34 }
 0xab2   : > { %2459 = vmatmul.mubr.msk.bf16.vlgmr.msra.gmra.mrb[36].mxu1 %vm750_vm2, %v1678_v52 }
 0xab3   : > { %2469 = vmatpush3.bf16.msra.mxu1 %v1835_v55  ;;  %v1679_v56 = vpack.c.bf16 %v1675_v54, %v1675_v54  ;;  %2470 = vmatprep.mubr.msk.bf16.mxu1 %vm2581_vm0, %v2580_v1 }
 0xab4   : > { %v2567_v57 = vpop.eup %2566  ;;  %2482 = vmatprep.subr.bf16.mxu1 %v2580_v1 }
 0xab5   : > { %v1676_v58 = vmul.f32 %v2567_v57, %v2559_v36  ;;  %2465 = vmatmul.mubr.msk.bf16.vlgmr.msra.gmra.mrb[32].mxu0 %vm750_vm2, %v1679_v56  ;;  %v2528_v36 = vld [vmem:[%s3032_s14] sm:$0xff]  }
 0xab6   : > { %2478 = vmatprep.mubr.msk.bf16.mxu0 %vm2581_vm0, %v2580_v1  ;;  %2475 = vmatpush3.bf16.msra.mxu0 %v2526_v0 }
 0xab7   : > { %v1680_v59 = vpack.c.bf16 %v1676_v58, %v1676_v58  ;;  %2476 = vmatprep.subr.bf16.mxu0 %v2580_v1 }
 0xaba   : > { %2471 = vmatmul.mubr.msk.bf16.vlgmr.msra.gmra.mrb[40].mxu1 %vm750_vm2, %v1680_v59  ;;  %2477 = vmatpush3.bf16.msra.mxu0 %v2527_v2 }
 0xabb   : > { %2486 = vmatprep.mubr.msk.bf16.mxu1 %vm2581_vm0, %v2580_v1  ;;  %2490 = vmatprep.subr.bf16.mxu0 %v2580_v1 }
 0xabc   : > { %2483 = vmatpush3.bf16.msra.mxu1 %v2528_v36 }
 0xabd   : > { %2484 = vmatprep.subr.bf16.mxu1 %v2580_v1 }
 0xac0   : > { %2485 = vmatpush3.bf16.msra.mxu1 %v2529_v37 }
 0xb1b   : > { %v1724_v60 = vpop.f32.mrb[28].mxu0 }
 0xb1c   : > { %v2454_v61 = vpop.f32.mrb[29].mxu0 }
 0xb1d   : > { %v1727_v62 = vpop.f32.mrb[30].mxu0 }
 0xb1e   : > { %v2455_v63 = vpop.f32.mrb[31].mxu0 }
 0xb85   : > { %v1773_v4 = vpop.f32.mrb[36].mxu1 }
 0xb86   : > { %1878 = vrot.lane.b32.xlu0 %v1773_v4, %s2587_s0  ;;  %v2460_v5 = vpop.f32.mrb[37].mxu1 }
 0xb87   : > { %v1776_v6 = vpop.f32.mrb[38].mxu1 }
 0xb88   : > { %v2461_v7 = vpop.f32.mrb[39].mxu1  ;;  %v1822_v8 = vpop.f32.mrb[32].mxu0 }
 0xb89   : > { %1882 = vrot.lane.b32.xlu1 %v1822_v8, %s3053_s30  ;;  %v2466_v3 = vpop.f32.mrb[33].mxu0 }
 0xb8a   : > { %v1825_v9 = vpop.f32.mrb[34].mxu0 }
 0xb8b   : > { %v2467_v10 = vpop.f32.mrb[35].mxu0 }
 0xb8d   : > { %v1871_v11 = vpop.f32.mrb[40].mxu1 }
 0xb8e   : > { %1886 = vrot.lane.b32.xlu0 %v1871_v11, %s3054_s27  ;;  %v2472_v12 = vpop.f32.mrb[41].mxu1 }
 0xb8f   : > { %v1874_v13 = vpop.f32.mrb[42].mxu1  ;;  %v2287_v12 = vld [vmem:[%s3036_s18] ss:$0 sm:$0xff] }
 0xb90   : > { %v2473_v14 = vpop.f32.mrb[43].mxu1 }
 0xb91   : > { %v2288_v14 = vld [vmem:[%s3037_s19] ss:$0 sm:$0xff] }
 0xbf8   : > { %v1879_v17 = vpop.permute.xlu0 %1878 }
 0xbf9   : > { %v1889_v20 = vsel %vm750_vm2, %v1724_v60, %v1879_v17 }
 0xbfb   : > { %v1883_v18 = vpop.permute.xlu1 %1882 }
 0xbfc   : > { %v1890_v21 = vsel %vm1198_vm4, %v1889_v20, %v1883_v18 }
 0xc00   : > { %v1887_v22 = vpop.permute.xlu0 %1886 }
 0xc01   : > { %v1891_v19 = vsel %vm1200_vm5, %v1890_v21, %v1887_v22 }
 0xc02   : > { %v1892_v23 = vpack.c.bf16 %v1891_v19, %v1891_v19 }
 0xc04   : > { %2479 = vmatmul.mubr.msk.bf16.vlgmr.msra.gmra.mrb[36].mxu0 %vm669_vm1, %v1892_v23 }
 0xc05   : > { %2498 = vmatprep.mubr.msk.bf16.mxu0 %vm2581_vm0, %v2580_v1 }
 0xcd7   : > { %v1948_v16 = vpop.f32.mrb[36].mxu0 }
 0xcd8   : > { %v1949_v24 = vadd.f32 %v2271_v15, %v1948_v16  ;;  %v2480_v25 = vpop.f32.mrb[37].mxu0 }
 0xcd9   : > { %v1951_v27 = vpop.f32.mrb[38].mxu0 }
 0xcda   : > { %v2481_v28 = vpop.f32.mrb[39].mxu0  ;;  %v1954_v29 = vadd.f32 %v1949_v24, %v2863_v26  ;;  %v2530_v26 = vld [vmem:[%s3034_s16] sm:$0xff]  }
 0xcdb   : > { %2491 = vmatpush3.bf16.msra.mxu0 %v2530_v26 }
 0xcdc   : > { %v1957_v30 = vsel %vm669_vm1, %v1954_v29, 0.0  ;;  %2492 = vmatprep.subr.bf16.mxu0 %v2580_v1 }
 0xcdd   : > { %1958 = vadd.xlane.f32.xlu1 %v1957_v30 }
 0xcdf   : > { %2493 = vmatpush3.bf16.msra.mxu0 %v2531_v38 }
 0xce0   : > { %2494 = vmatprep.subr.bf16.mxu0 %v2580_v1 }
 0xce3   : > { %2495 = vmatpush3.bf16.msra.mxu0 %v2532_v49 }
 0xce4   : > { %2496 = vmatprep.subr.bf16.mxu0 %v2580_v1  ;;  %v2281_v1 = vld [vmem:[%s3035_s17] ss:$0 sm:$0xff] }
 0xce7   : > { %2497 = vmatpush3.bf16.msra.mxu0 %v2533_v50 }
 0xd6a   : > { %v1959_v31 = vpop.xlane.xlu1 %1958 }
 0xd6b   : > { %v1960_v32 = vmul.f32 0.03125, %v1959_v31 }
 0xd6d   : > { %v1961_v33 = vsub.f32 %v1954_v29, %v1960_v32 }
 0xd6f   : > { %v1962_v34 = vmul.f32 %v1961_v33, %v1961_v33 }
 0xd71   : > { %v1963_v35 = vsel %vm669_vm1, %v1962_v34, 0.0 }
 0xd72   : > { %1964 = vadd.xlane.f32.xlu0 %v1963_v35 }
 0xdff   : > { %v1965_v39 = vpop.xlane.xlu0 %1964 }
 0xe00   : > { %v1966_v40 = vmul.f32 0.03125, %v1965_v39 }
 0xe02   : > { %v1967_v41 = vadd.f32 1e-05, %v1966_v40 }
 0xe04   : > { %2568 = vrsqrt.f32 %v1967_v41 }
 0xe0e   : > { %v2569_v42 = vpop.eup %2568 }
 0xe0f   : > { %v1969_v44 = vmul.f32 %v2569_v42, %v1961_v33 }
 0xe11   : > { %v1976_v47 = vmul.f32 %v2275_v43, %v1969_v44 }
 0xe13   : > { %v1983_v46 = vadd.f32 %v2276_v45, %v1976_v47 }
 0xe15   : > { %v1984_v48 = vpack.c.bf16 %v1983_v46, %v1983_v46 }
 0xe17   : > { %2487 = vmatmul.mubr.msk.bf16.vlgmr.msra.gmra.mrb[44].mxu1 %vm669_vm1, %v1984_v48 }
 0xeea   : > { %v2045_v52 = vpop.f32.mrb[44].mxu1 }
 0xeeb   : > { %v2046_v53 = vadd.f32 %v2277_v51, %v2045_v52  ;;  %v2488_v54 = vpop.f32.mrb[45].mxu1 }
 0xeec   : > { %v2048_v55 = vpop.f32.mrb[46].mxu1 }
 0xeed   : > { %v2051_v56 = vmax.f32 %v2046_v53, 0.0  ;;  %v2489_v57 = vpop.f32.mrb[47].mxu1 }
 0xeef   : > { %v2052_v58 = vpack.c.bf16 %v2051_v56, %v2051_v56 }
 0xef1   : > { %2499 = vmatmul.mubr.msk.bf16.vlgmr.msra.gmra.mrb[40].mxu0 %vm2092_vm6, %v2052_v58 }
 0xfc4   : > { %v2130_v59 = vpop.f32.mrb[40].mxu0 }
 0xfc5   : > { %v2131_v60 = vadd.f32 %v2281_v1, %v2130_v59  ;;  %v2500_v61 = vpop.f32.mrb[41].mxu0 }
 0xfc6   : > { %v2133_v62 = vpop.f32.mrb[42].mxu0 }
 0xfc7   : > { %v2501_v63 = vpop.f32.mrb[43].mxu0  ;;  %v2136_v0 = vadd.f32 %v2131_v60, %v1983_v46 }
 0xfc9   : > { %v2139_v2 = vsel %vm669_vm1, %v2136_v0, 0.0 }
 0xfca   : > { %2140 = vadd.xlane.f32.xlu0 %v2139_v2 }
0x1057   : > { %v2141_v4 = vpop.xlane.xlu0 %2140 }
0x1058   : > { %v2142_v5 = vmul.f32 0.03125, %v2141_v4 }
0x105a   : > { %v2143_v6 = vsub.f32 %v2136_v0, %v2142_v5 }
0x105c   : > { %v2144_v7 = vmul.f32 %v2143_v6, %v2143_v6 }
0x105e   : > { %v2145_v8 = vsel %vm669_vm1, %v2144_v7, 0.0 }
0x105f   : > { %2146 = vadd.xlane.f32.xlu1 %v2145_v8 }
0x10ec   : > { %v2147_v3 = vpop.xlane.xlu1 %2146 }
0x10ed   : > { %v2148_v9 = vmul.f32 0.03125, %v2147_v3 }
0x10ef   : > { %v2149_v10 = vadd.f32 1e-05, %v2148_v9 }
0x10f1   : > { %2570 = vrsqrt.f32 %v2149_v10 }
0x10fb   : > { %v2571_v11 = vpop.eup %2570 }
0x10fc   : > { %v2151_v13 = vmul.f32 %v2571_v11, %v2143_v6 }
0x10fe   : > { %v2158_v17 = vmul.f32 %v2287_v12, %v2151_v13 }
0x1100   : > { %v2165_v18 = vadd.f32 %v2288_v14, %v2158_v17 }
0x1102   : > { %2166 = vst.msk [vmem:[%s641_s23] sm:$0xff] %vm669_vm1, %v2165_v18 }
0x1103 PF: > { %s30_s1 = sadd.s32 1, %s2578_s1  }
0x1104   : > { %p27_p4 = scmp.ge.s32.totalorder %s30_s1, 4  }
0x1106   :  { %29 = sbr.rel (!%p27_p4) target bundleno = 6 (0x6), region = 133 }

</bundles_post_ra>
